<compile_context>
chip_gen: v5e
topology: v5e:2x2
jax: 0.10.0
libtpu: 0.0.40
codegen_flags: <defaults>
</compile_context>

<pallas_src>
import functools

import jax
import jax.numpy as jnp
from jax.experimental import pallas as pl
from jax.experimental.pallas import tpu as pltpu

BN_EPS = 1e-5


def _mlp2_kernel(x_ref, w1_ref, w_all_ref, vec_ref, o_ref, *, apply_sigmoid: bool):
    """3x (Linear -> ReLU -> BatchNorm) + padded head (+ optional sigmoid), one invocation.

    w_all_ref : (3, H, H) bf16   -- planes: fc2_w, fc3_w, head weight zero-padded to H cols
    vec_ref   : (16, H)  f32     -- rows 0..2 fc1/fc2/fc3 bias, 3..5 bn gamma, 6..8 bn beta,
                                    row 9 head bias (zero-padded), rows 10..15 padding.
    """

    def layer(h_bf16, w, i):
        # Linear on the MXU: bf16 operands, f32 accumulation.
        z = jnp.dot(h_bf16, w, preferred_element_type=jnp.float32)
        z = jnp.maximum(z + vec_ref[i:i + 1, :], 0.0)                    # bias + ReLU
        # BatchNorm1d (training mode, biased batch variance), folded into one FMA:
        #   s = gamma * rsqrt(var + eps);  t = beta - mean * s;  out = z * s + t
        mean = jnp.mean(z, axis=0, keepdims=True)
        var = jnp.maximum(jnp.mean(z * z, axis=0, keepdims=True) - mean * mean, 0.0)
        s = vec_ref[3 + i:4 + i, :] * jax.lax.rsqrt(var + BN_EPS)
        t = vec_ref[6 + i:7 + i, :] - mean * s
        return z * s + t

    h = layer(x_ref[...], w1_ref[...], 0)                 # x already bf16
    h = layer(h.astype(jnp.bfloat16), w_all_ref[0], 1)
    h = layer(h.astype(jnp.bfloat16), w_all_ref[1], 2)

    # Lane-dense padded head: (B, H) x (H, H) -> (B, H), unmasked f32 stores.
    out = jnp.dot(h.astype(jnp.bfloat16), w_all_ref[2],
                  preferred_element_type=jnp.float32)
    out = out + vec_ref[9:10, :]
    if apply_sigmoid:
        out = jax.nn.sigmoid(out)                          # padded cols become 0.5; sliced off
    o_ref[...] = out


def prepare_params(params, task_type: str):
    """One-time packing / padding / bf16 cast of the static parameters.

    Keep the returned dict around and reuse it for every forward call; nothing in here
    re-executes on the hot path.
    """
    hidden = params["fc1_w"].shape[1]
    if task_type == "ipp_classification":
        wh, bh = params["fc_head_w"], params["fc_head_b"]
    else:
        wh, bh = params["fc4_w"], params["fc4_b"]
    out_dim = wh.shape[1]
    apply_sigmoid = task_type.split("_")[-1] == "classification"

    # Head weight zero-padded to the full hidden width, stacked with fc2/fc3 weights.
    wh_pad = jnp.zeros((hidden, hidden), jnp.float32).at[:, :out_dim].set(wh)
    w_all = jnp.stack([params["fc2_w"], params["fc3_w"], wh_pad]).astype(jnp.bfloat16)
    w1 = params["fc1_w"].astype(jnp.bfloat16)

    vecs = jnp.zeros((16, hidden), jnp.float32)
    vecs = vecs.at[0, :].set(params["fc1_b"].reshape(-1))
    vecs = vecs.at[1, :].set(params["fc2_b"].reshape(-1))
    vecs = vecs.at[2, :].set(params["fc3_b"].reshape(-1))
    vecs = vecs.at[3, :].set(params["bn1_g"].reshape(-1))
    vecs = vecs.at[4, :].set(params["bn2_g"].reshape(-1))
    vecs = vecs.at[5, :].set(params["bn3_g"].reshape(-1))
    vecs = vecs.at[6, :].set(params["bn1_b"].reshape(-1))
    vecs = vecs.at[7, :].set(params["bn2_b"].reshape(-1))
    vecs = vecs.at[8, :].set(params["bn3_b"].reshape(-1))
    vecs = vecs.at[9, :out_dim].set(bh.reshape(-1))

    packed = {
        "w1": w1,                    # (in_dim, H)  bf16
        "w_all": w_all,              # (3, H, H)    bf16
        "vecs": vecs,                # (16, H)      f32
        "out_dim": out_dim,          # python int (static)
        "apply_sigmoid": apply_sigmoid,
    }
    jax.block_until_ready((packed["w1"], packed["w_all"], packed["vecs"]))
    return packed


@functools.partial(jax.jit, static_argnames=("apply_sigmoid",))
def model_mlp2_forward_padded(x, w1, w_all, vecs, *, apply_sigmoid: bool):
    """Hot path: returns the (batch, hidden) padded output; columns >= out_dim are junk
    (0.5 after sigmoid, 0.0 otherwise) and should be ignored by the consumer."""
    batch = x.shape[0]
    in_dim, hidden = w1.shape

    x_bf = x.astype(jnp.bfloat16)   # halves the x DMA; BN math stays f32 in-kernel

    flops = 2 * batch * (in_dim * hidden + 3 * hidden * hidden)
    transcendentals = 3 * hidden + (batch * hidden if apply_sigmoid else 0)
    bytes_accessed = (batch * in_dim * 2          # x (bf16)
                      + w1.size * 2 + w_all.size * 2
                      + vecs.size * 4
                      + batch * hidden * 4)       # output (f32)

    vmem_spec = pl.BlockSpec(memory_space=pltpu.MemorySpace.VMEM)

    return pl.pallas_call(
        functools.partial(_mlp2_kernel, apply_sigmoid=apply_sigmoid),
        out_shape=jax.ShapeDtypeStruct((batch, hidden), jnp.float32),
        in_specs=[vmem_spec, vmem_spec, vmem_spec, vmem_spec],
        out_specs=vmem_spec,
        cost_estimate=pl.CostEstimate(flops=flops,
                                      transcendentals=transcendentals,
                                      bytes_accessed=bytes_accessed),
    )(x_bf, w1, w_all, vecs)


def model_mlp2_forward(x, packed):
    """Convenience wrapper: padded kernel output sliced to the real head width."""
    out = model_mlp2_forward_padded(x, packed["w1"], packed["w_all"], packed["vecs"],
                                    apply_sigmoid=packed["apply_sigmoid"])
    return out[:, :packed["out_dim"]]


def init_params(key, in_dim=12, hidden=256, n_actions=4):
    """Deterministic synthetic parameters matching ModelMLP2.__init__ shapes."""
    keys = jax.random.split(key, 10)

    def linear(kw, kb, fan_in, fan_out):
        bound = 1.0 / jnp.sqrt(jnp.float32(fan_in))
        w = jax.random.uniform(kw, (fan_in, fan_out), jnp.float32, -bound, bound)
        b = jax.random.uniform(kb, (1, fan_out), jnp.float32, -bound, bound)
        return w, b

    fc1_w, fc1_b = linear(keys[0], keys[1], in_dim, hidden)
    fc2_w, fc2_b = linear(keys[2], keys[3], hidden, hidden)
    fc3_w, fc3_b = linear(keys[4], keys[5], hidden, hidden)
    fc4_w, fc4_b = linear(keys[6], keys[7], hidden, 1)
    fch_w, fch_b = linear(keys[8], keys[9], hidden, n_actions)

    ones = jnp.ones((1, hidden), jnp.float32)
    zeros = jnp.zeros((1, hidden), jnp.float32)

    return {
        "fc1_w": fc1_w, "fc1_b": fc1_b, "bn1_g": ones, "bn1_b": zeros,
        "fc2_w": fc2_w, "fc2_b": fc2_b, "bn2_g": ones, "bn2_b": zeros,
        "fc3_w": fc3_w, "fc3_b": fc3_b, "bn3_g": ones, "bn3_b": zeros,
        "fc4_w": fc4_w, "fc4_b": fc4_b,
        "fc_head_w": fch_w, "fc_head_b": fch_b,
    }


def _reference_forward(x, params, task_type):
    """Pure-JAX (f32) reference for sanity checking."""
    def blk(h, w, b, g, be):
        z = jnp.maximum(h @ w + b, 0.0)
        m = jnp.mean(z, axis=0, keepdims=True)
        v = jnp.mean((z - m) ** 2, axis=0, keepdims=True)
        return (z - m) / jnp.sqrt(v + BN_EPS) * g + be

    h = blk(x, params["fc1_w"], params["fc1_b"], params["bn1_g"], params["bn1_b"])
    h = blk(h, params["fc2_w"], params["fc2_b"], params["bn2_g"], params["bn2_b"])
    h = blk(h, params["fc3_w"], params["fc3_b"], params["bn3_g"], params["bn3_b"])
    if task_type == "ipp_classification":
        out = h @ params["fc_head_w"] + params["fc_head_b"]
    else:
        out = h @ params["fc4_w"] + params["fc4_b"]
    if task_type.split("_")[-1] == "classification":
        out = jax.nn.sigmoid(out)
    return out


if __name__ == "__main__":
    key = jax.random.PRNGKey(0)
    k_param, k_data = jax.random.split(key)

    batch = 32          # batch_size from params dict (synthetic small value)
    in_dim = 12         # fc1 input dim fixed by the module
    n_actions = 4       # params['experiment']['constraints']['num_actions'] (synthetic)

    params = init_params(k_param, in_dim=in_dim, hidden=256, n_actions=n_actions)
    x = jax.random.normal(k_data, (batch, in_dim), jnp.float32)

    # One-time packing per head; reused across every forward call.
    packed_cls = prepare_params(params, "ipp_classification")
    packed_reg = prepare_params(params, "ipp_regression")

    # Classification head path (fc_head + sigmoid).
    out_cls = jax.block_until_ready(model_mlp2_forward(x, packed_cls))
    ref_cls = _reference_forward(x, params, "ipp_classification")
    assert out_cls.shape == (batch, n_actions)
    # bf16 MXU operands -> slightly looser tolerance than a pure-f32 path.
    assert jnp.allclose(out_cls, ref_cls, atol=5e-2, rtol=5e-2)

    # Regression head path (fc4, no sigmoid).
    out_reg = jax.block_until_ready(model_mlp2_forward(x, packed_reg))
    ref_reg = _reference_forward(x, params, "ipp_regression")
    assert out_reg.shape == (batch, 1)
    assert jnp.allclose(out_reg, ref_reg, atol=5e-2, rtol=5e-2)

    # Padded fast path (no post-kernel slice launch): consumer ignores cols >= out_dim.
    out_pad = jax.block_until_ready(
        model_mlp2_forward_padded(x, packed_cls["w1"], packed_cls["w_all"],
                                  packed_cls["vecs"],
                                  apply_sigmoid=packed_cls["apply_sigmoid"]))
    assert out_pad.shape == (batch, 256)
    assert jnp.allclose(out_pad[:, :n_actions], ref_cls, atol=5e-2, rtol=5e-2)

    print("KERNEL_OK")
</pallas_src>

<mosaic_0001>
module attributes {stable_mosaic.version = 11 : i64} {
  func.func @_mlp2_kernel(%arg0: memref<32x12xbf16, #tpu.memory_space<vmem>>, %arg1: memref<12x256xbf16, #tpu.memory_space<vmem>>, %arg2: memref<3x256x256xbf16, #tpu.memory_space<vmem>>, %arg3: memref<16x256xf32, #tpu.memory_space<vmem>>, %arg4: memref<32x256xf32, #tpu.memory_space<vmem>>) attributes {dimension_semantics = [], scalar_prefetch = 0 : i64, scratch_operands = 0 : i64, tpu.core_type = #tpu.core_type<tc>} {
    %c0 = arith.constant 0 : index
    %c0_0 = arith.constant 0 : index
    %0 = vector.load %arg0[%c0, %c0_0] : memref<32x12xbf16, #tpu.memory_space<vmem>>, vector<32x12xbf16>
    %c0_1 = arith.constant 0 : index
    %c0_2 = arith.constant 0 : index
    %1 = vector.load %arg1[%c0_1, %c0_2] : memref<12x256xbf16, #tpu.memory_space<vmem>>, vector<12x256xbf16>
    %cst = arith.constant dense<0.000000e+00> : vector<32x256xf32>
    %2 = tpu.matmul %0, %1, %cst {dimension_numbers = #tpu.dot_dimension_numbers<[1], [0], [0], [1], [0, 0, 1, 1], [], []>} : vector<32x12xbf16>, vector<12x256xbf16>, vector<32x256xf32> -> vector<32x256xf32>
    %c0_3 = arith.constant 0 : index
    %c0_4 = arith.constant 0 : index
    %3 = vector.load %arg3[%c0_3, %c0_4] : memref<16x256xf32, #tpu.memory_space<vmem>>, vector<1x256xf32>
    %4 = vector.broadcast %3 : vector<1x256xf32> to vector<32x256xf32>
    %5 = arith.addf %2, %4 : vector<32x256xf32>
    %cst_5 = arith.constant 0.000000e+00 : f32
    %6 = vector.broadcast %cst_5 : f32 to vector<32x256xf32>
    %7 = arith.maximumf %5, %6 : vector<32x256xf32>
    %cst_6 = arith.constant dense<0.000000e+00> : vector<256xf32>
    %8 = vector.multi_reduction <add>, %7, %cst_6 [0] : vector<32x256xf32> to vector<256xf32>
    %9 = vector.shape_cast %8 : vector<256xf32> to vector<1x256xf32>
    %cst_7 = arith.constant 3.200000e+01 : f32
    %10 = vector.broadcast %cst_7 : f32 to vector<1x256xf32>
    %11 = arith.divf %9, %10 : vector<1x256xf32>
    %12 = arith.mulf %7, %7 : vector<32x256xf32>
    %cst_8 = arith.constant dense<0.000000e+00> : vector<256xf32>
    %13 = vector.multi_reduction <add>, %12, %cst_8 [0] : vector<32x256xf32> to vector<256xf32>
    %14 = vector.shape_cast %13 : vector<256xf32> to vector<1x256xf32>
    %cst_9 = arith.constant 3.200000e+01 : f32
    %15 = vector.broadcast %cst_9 : f32 to vector<1x256xf32>
    %16 = arith.divf %14, %15 : vector<1x256xf32>
    %17 = arith.mulf %11, %11 : vector<1x256xf32>
    %18 = arith.subf %16, %17 : vector<1x256xf32>
    %cst_10 = arith.constant 0.000000e+00 : f32
    %19 = vector.broadcast %cst_10 : f32 to vector<1x256xf32>
    %20 = arith.maximumf %18, %19 : vector<1x256xf32>
    %c3 = arith.constant 3 : index
    %c0_11 = arith.constant 0 : index
    %21 = vector.load %arg3[%c3, %c0_11] : memref<16x256xf32, #tpu.memory_space<vmem>>, vector<1x256xf32>
    %cst_12 = arith.constant 9.99999974E-6 : f32
    %22 = vector.broadcast %cst_12 : f32 to vector<1x256xf32>
    %23 = arith.addf %20, %22 : vector<1x256xf32>
    %24 = math.rsqrt %23 : vector<1x256xf32>
    %25 = arith.mulf %21, %24 : vector<1x256xf32>
    %c6 = arith.constant 6 : index
    %c0_13 = arith.constant 0 : index
    %26 = vector.load %arg3[%c6, %c0_13] : memref<16x256xf32, #tpu.memory_space<vmem>>, vector<1x256xf32>
    %27 = arith.mulf %11, %25 : vector<1x256xf32>
    %28 = arith.subf %26, %27 : vector<1x256xf32>
    %29 = vector.broadcast %25 : vector<1x256xf32> to vector<32x256xf32>
    %30 = arith.mulf %7, %29 : vector<32x256xf32>
    %31 = vector.broadcast %28 : vector<1x256xf32> to vector<32x256xf32>
    %32 = arith.addf %30, %31 : vector<32x256xf32>
    %33 = arith.truncf %32 : vector<32x256xf32> to vector<32x256xbf16>
    %c0_14 = arith.constant 0 : index
    %c0_15 = arith.constant 0 : index
    %c0_16 = arith.constant 0 : index
    %34 = vector.load %arg2[%c0_14, %c0_15, %c0_16] : memref<3x256x256xbf16, #tpu.memory_space<vmem>>, vector<1x256x256xbf16>
    %35 = vector.shape_cast %34 : vector<1x256x256xbf16> to vector<256x256xbf16>
    %cst_17 = arith.constant dense<0.000000e+00> : vector<32x256xf32>
    %36 = tpu.matmul %33, %35, %cst_17 {dimension_numbers = #tpu.dot_dimension_numbers<[1], [0], [0], [1], [0, 0, 1, 1], [], []>} : vector<32x256xbf16>, vector<256x256xbf16>, vector<32x256xf32> -> vector<32x256xf32>
    %c1 = arith.constant 1 : index
    %c0_18 = arith.constant 0 : index
    %37 = vector.load %arg3[%c1, %c0_18] : memref<16x256xf32, #tpu.memory_space<vmem>>, vector<1x256xf32>
    %38 = vector.broadcast %37 : vector<1x256xf32> to vector<32x256xf32>
    %39 = arith.addf %36, %38 : vector<32x256xf32>
    %cst_19 = arith.constant 0.000000e+00 : f32
    %40 = vector.broadcast %cst_19 : f32 to vector<32x256xf32>
    %41 = arith.maximumf %39, %40 : vector<32x256xf32>
    %cst_20 = arith.constant dense<0.000000e+00> : vector<256xf32>
    %42 = vector.multi_reduction <add>, %41, %cst_20 [0] : vector<32x256xf32> to vector<256xf32>
    %43 = vector.shape_cast %42 : vector<256xf32> to vector<1x256xf32>
    %cst_21 = arith.constant 3.200000e+01 : f32
    %44 = vector.broadcast %cst_21 : f32 to vector<1x256xf32>
    %45 = arith.divf %43, %44 : vector<1x256xf32>
    %46 = arith.mulf %41, %41 : vector<32x256xf32>
    %cst_22 = arith.constant dense<0.000000e+00> : vector<256xf32>
    %47 = vector.multi_reduction <add>, %46, %cst_22 [0] : vector<32x256xf32> to vector<256xf32>
    %48 = vector.shape_cast %47 : vector<256xf32> to vector<1x256xf32>
    %cst_23 = arith.constant 3.200000e+01 : f32
    %49 = vector.broadcast %cst_23 : f32 to vector<1x256xf32>
    %50 = arith.divf %48, %49 : vector<1x256xf32>
    %51 = arith.mulf %45, %45 : vector<1x256xf32>
    %52 = arith.subf %50, %51 : vector<1x256xf32>
    %cst_24 = arith.constant 0.000000e+00 : f32
    %53 = vector.broadcast %cst_24 : f32 to vector<1x256xf32>
    %54 = arith.maximumf %52, %53 : vector<1x256xf32>
    %c4 = arith.constant 4 : index
    %c0_25 = arith.constant 0 : index
    %55 = vector.load %arg3[%c4, %c0_25] : memref<16x256xf32, #tpu.memory_space<vmem>>, vector<1x256xf32>
    %cst_26 = arith.constant 9.99999974E-6 : f32
    %56 = vector.broadcast %cst_26 : f32 to vector<1x256xf32>
    %57 = arith.addf %54, %56 : vector<1x256xf32>
    %58 = math.rsqrt %57 : vector<1x256xf32>
    %59 = arith.mulf %55, %58 : vector<1x256xf32>
    %c7 = arith.constant 7 : index
    %c0_27 = arith.constant 0 : index
    %60 = vector.load %arg3[%c7, %c0_27] : memref<16x256xf32, #tpu.memory_space<vmem>>, vector<1x256xf32>
    %61 = arith.mulf %45, %59 : vector<1x256xf32>
    %62 = arith.subf %60, %61 : vector<1x256xf32>
    %63 = vector.broadcast %59 : vector<1x256xf32> to vector<32x256xf32>
    %64 = arith.mulf %41, %63 : vector<32x256xf32>
    %65 = vector.broadcast %62 : vector<1x256xf32> to vector<32x256xf32>
    %66 = arith.addf %64, %65 : vector<32x256xf32>
    %67 = arith.truncf %66 : vector<32x256xf32> to vector<32x256xbf16>
    %c1_28 = arith.constant 1 : index
    %c0_29 = arith.constant 0 : index
    %c0_30 = arith.constant 0 : index
    %68 = vector.load %arg2[%c1_28, %c0_29, %c0_30] : memref<3x256x256xbf16, #tpu.memory_space<vmem>>, vector<1x256x256xbf16>
    %69 = vector.shape_cast %68 : vector<1x256x256xbf16> to vector<256x256xbf16>
    %cst_31 = arith.constant dense<0.000000e+00> : vector<32x256xf32>
    %70 = tpu.matmul %67, %69, %cst_31 {dimension_numbers = #tpu.dot_dimension_numbers<[1], [0], [0], [1], [0, 0, 1, 1], [], []>} : vector<32x256xbf16>, vector<256x256xbf16>, vector<32x256xf32> -> vector<32x256xf32>
    %c2 = arith.constant 2 : index
    %c0_32 = arith.constant 0 : index
    %71 = vector.load %arg3[%c2, %c0_32] : memref<16x256xf32, #tpu.memory_space<vmem>>, vector<1x256xf32>
    %72 = vector.broadcast %71 : vector<1x256xf32> to vector<32x256xf32>
    %73 = arith.addf %70, %72 : vector<32x256xf32>
    %cst_33 = arith.constant 0.000000e+00 : f32
    %74 = vector.broadcast %cst_33 : f32 to vector<32x256xf32>
    %75 = arith.maximumf %73, %74 : vector<32x256xf32>
    %cst_34 = arith.constant dense<0.000000e+00> : vector<256xf32>
    %76 = vector.multi_reduction <add>, %75, %cst_34 [0] : vector<32x256xf32> to vector<256xf32>
    %77 = vector.shape_cast %76 : vector<256xf32> to vector<1x256xf32>
    %cst_35 = arith.constant 3.200000e+01 : f32
    %78 = vector.broadcast %cst_35 : f32 to vector<1x256xf32>
    %79 = arith.divf %77, %78 : vector<1x256xf32>
    %80 = arith.mulf %75, %75 : vector<32x256xf32>
    %cst_36 = arith.constant dense<0.000000e+00> : vector<256xf32>
    %81 = vector.multi_reduction <add>, %80, %cst_36 [0] : vector<32x256xf32> to vector<256xf32>
    %82 = vector.shape_cast %81 : vector<256xf32> to vector<1x256xf32>
    %cst_37 = arith.constant 3.200000e+01 : f32
    %83 = vector.broadcast %cst_37 : f32 to vector<1x256xf32>
    %84 = arith.divf %82, %83 : vector<1x256xf32>
    %85 = arith.mulf %79, %79 : vector<1x256xf32>
    %86 = arith.subf %84, %85 : vector<1x256xf32>
    %cst_38 = arith.constant 0.000000e+00 : f32
    %87 = vector.broadcast %cst_38 : f32 to vector<1x256xf32>
    %88 = arith.maximumf %86, %87 : vector<1x256xf32>
    %c5 = arith.constant 5 : index
    %c0_39 = arith.constant 0 : index
    %89 = vector.load %arg3[%c5, %c0_39] : memref<16x256xf32, #tpu.memory_space<vmem>>, vector<1x256xf32>
    %cst_40 = arith.constant 9.99999974E-6 : f32
    %90 = vector.broadcast %cst_40 : f32 to vector<1x256xf32>
    %91 = arith.addf %88, %90 : vector<1x256xf32>
    %92 = math.rsqrt %91 : vector<1x256xf32>
    %93 = arith.mulf %89, %92 : vector<1x256xf32>
    %c8 = arith.constant 8 : index
    %c0_41 = arith.constant 0 : index
    %94 = vector.load %arg3[%c8, %c0_41] : memref<16x256xf32, #tpu.memory_space<vmem>>, vector<1x256xf32>
    %95 = arith.mulf %79, %93 : vector<1x256xf32>
    %96 = arith.subf %94, %95 : vector<1x256xf32>
    %97 = vector.broadcast %93 : vector<1x256xf32> to vector<32x256xf32>
    %98 = arith.mulf %75, %97 : vector<32x256xf32>
    %99 = vector.broadcast %96 : vector<1x256xf32> to vector<32x256xf32>
    %100 = arith.addf %98, %99 : vector<32x256xf32>
    %101 = arith.truncf %100 : vector<32x256xf32> to vector<32x256xbf16>
    %c2_42 = arith.constant 2 : index
    %c0_43 = arith.constant 0 : index
    %c0_44 = arith.constant 0 : index
    %102 = vector.load %arg2[%c2_42, %c0_43, %c0_44] : memref<3x256x256xbf16, #tpu.memory_space<vmem>>, vector<1x256x256xbf16>
    %103 = vector.shape_cast %102 : vector<1x256x256xbf16> to vector<256x256xbf16>
    %cst_45 = arith.constant dense<0.000000e+00> : vector<32x256xf32>
    %104 = tpu.matmul %101, %103, %cst_45 {dimension_numbers = #tpu.dot_dimension_numbers<[1], [0], [0], [1], [0, 0, 1, 1], [], []>} : vector<32x256xbf16>, vector<256x256xbf16>, vector<32x256xf32> -> vector<32x256xf32>
    %c9 = arith.constant 9 : index
    %c0_46 = arith.constant 0 : index
    %105 = vector.load %arg3[%c9, %c0_46] : memref<16x256xf32, #tpu.memory_space<vmem>>, vector<1x256xf32>
    %106 = vector.broadcast %105 : vector<1x256xf32> to vector<32x256xf32>
    %107 = arith.addf %104, %106 : vector<32x256xf32>
    %108 = arith.negf %107 : vector<32x256xf32>
    %109 = math.exp %108 : vector<32x256xf32>
    %cst_47 = arith.constant 1.000000e+00 : f32
    %110 = vector.broadcast %cst_47 : f32 to vector<32x256xf32>
    %111 = arith.addf %110, %109 : vector<32x256xf32>
    %112 = arith.divf %110, %111 : vector<32x256xf32>
    %c0_48 = arith.constant 0 : index
    %c0_49 = arith.constant 0 : index
    %113 = vector.load %arg4[%c0_48, %c0_49] : memref<32x256xf32, #tpu.memory_space<vmem>>, vector<32x256xf32>
    tpu.vector_store %arg4[%c0_48, %c0_49], %112 {strides = array<i32>} : memref<32x256xf32, #tpu.memory_space<vmem>>, vector<32x256xf32>,
    return
  }
}

</mosaic_0001>

<bundles_post_ra>
// kernel: model_mlp2_forward_padded.1
= control target key start
LH: loop header
LB: loop body
LE: loop exit
PB: predicated region body
PF: predicated region fallthrough
CT: control target
= control target key end

     0   :  { %9 = vsyncpa [#allocation3], 0  ;;  %s2500_s0 = inlined_call_operand.vmem [shape: bf16[32,12], index: 0, kind: input, shape index: {}]   ;;  %s2501_s1 = inlined_call_operand.vmem [shape: bf16[12,256], index: 1, kind: input, shape index: {}]   ;;  %s2502_s2 = inlined_call_operand.hbm [shape: bf16[3,256,256], index: 2, kind: input, shape index: {}]   ;;  %s2503_s3 = inlined_call_operand.vmem [shape: f32[16,256], index: 3, kind: input, shape index: {}]   ;;  %s2504_s4 = inlined_call_operand.hbm [shape: f32[32,256], index: 4, kind: output, shape index: {}]  }
   0x1   :  { %10 = vsyncpa [#allocation4], 0  ;;  %s19_s17 = sshll.u32 %s2502_s2, 4  ;;  %s2153_s18 = smov [#allocation2]   ;;  %s20_s17 = int_to_ptr.hbm [resolvable:$true] %s19_s17 }
   0x2   :  { %s21_s19 = sshll.u32 %s2153_s18, 4  ;;  %s2154_s20 = smov 128   ;;  %s22_s19 = int_to_ptr.vmem [resolvable:$true] %s21_s19 }
   0x3   :  { %s2155_s21 = smov 8  }
   0x4   :  { %27 = dma.hbm_to_vmem [thread:$0]  %s20_s17, 12288, %s22_s19, [#allocation3], %s2154_s20, %s2154_s20, %s2155_s21  }
   0x5   :  { %2149 = dma.done.wait [#allocation3], 12288  }
   0x6   :  { %2150 = vsyncadd [#allocation3], 4294955008  ;;  %vm72_vm0 = vcmask 1045504   ;;  %v1537_v0 = vld [vmem:[%s2501_s1] sm:$0xf]  ;;  %vm65_vm1 = vcmask 97280  }
   0x7   :  { %v1951_v1 = vld [vmem:[%s2501_s1 + $0x4] sm:$0x30]  ;;  %v1950_v2 = vld [vmem:[%s2501_s1 + $0x4] sm:$0xf]  ;;  %v1539_v4 = vld [vmem:[%s2501_s1 + $0x8] sm:$0x30] }
   0x8   :  { %v1538_v3 = vor.u32 %v1951_v1, %v1537_v0  ;;  %v1542_v5 = vor.u32 %v1950_v2, %v1539_v4  ;;  %v1948_v7 = vld [vmem:[%s2500_s0] sm:$0xff]  ;;  %v1949_v9 = vld [vmem:[%s2500_s0 + $0x8] sm:$0xff]  ;;  %v2156_v16 = vmov 32.0   ;;  %v1608_v47 = vld [vmem:[#allocation2 + $0x70] sm:$0xf]  ;;  %vm213_vm8 = vcmask 1040384  }
   0x9   :  { %v41_v14 = vld [vmem:[%s2503_s3] ss:$8 sm:$0x3]  ;;  %2055 = vrcp.f32 %v2156_v16  ;;  %v1967_v48 = vld [vmem:[#allocation2 + $0x74] sm:$0xf0]  ;;  %s1514_s27 = sshll.u32 %s2504_s4, 4  ;;  %s1515_s27 = int_to_ptr.hbm [resolvable:$true] %s1514_s27 }
   0xa   :  { %v74_v6 = vsel %vm72_vm0, %v1538_v3, 0  ;;  %v77_v8 = vsel %vm72_vm0, %v1542_v5, 0  ;;  %v43_v15 = vperm.slane %v41_v14, 0  ;;  %v44_v17 = vperm.slane %v41_v14, 1  ;;  %v1672_v49 = vld [vmem:[#allocation2 + $0xf0] sm:$0xf] }
   0xb   :  { %86 = vmatpush.bf16.msra.mxu0 %v74_v6  ;;  %105 = vmatpush.bf16.msra.mxu1 %v77_v8  ;;  %v1609_v53 = vor.u32 %v1967_v48, %v1608_v47  ;;  %v1983_v54 = vld [vmem:[#allocation2 + $0xf4] sm:$0xf0]  ;;  %v1966_v55 = vld [vmem:[#allocation2 + $0x74] sm:$0xf]  ;;  %v1610_v60 = vld [vmem:[#allocation2 + $0x78] sm:$0xf0] }
   0xc   :  { %v1673_v59 = vor.u32 %v1983_v54, %v1672_v49  ;;  %v1982_v61 = vld [vmem:[#allocation2 + $0xf4] sm:$0xf]  ;;  %v1613_v1 = vor.u32 %v1966_v55, %v1610_v60  ;;  %v1674_v2 = vld [vmem:[#allocation2 + $0xf8] sm:$0xf0]  ;;  %v1965_v8 = vld [vmem:[#allocation2 + $0x64] sm:$0xf0] }
   0xd   :  { %456 = vmatpush.bf16.msra.mxu2 %v1609_v53  ;;  %v1677_v6 = vor.u32 %v1982_v61, %v1674_v2  ;;  %v1964_v14 = vld [vmem:[#allocation2 + $0x64] sm:$0xf]  ;;  %v1594_v47 = vld [vmem:[#allocation2 + $0x58] sm:$0xf0]  ;;  %v1961_v61 = vld [vmem:[#allocation2 + $0x44] sm:$0xf0] }
   0xe   :  { %1543 = vmatmul.msk.bf16.vlgmr.msra.gmra.mxu0 %vm65_vm1, %v1948_v7  ;;  %1545 = vmatmul.msk.bf16.vlgmr.msra.gmra.mxu1 %vm65_vm1, %v1948_v7  ;;  %v1600_v7 = vld [vmem:[#allocation2 + $0x60] sm:$0xf]  ;;  %v1658_v53 = vld [vmem:[#allocation2 + $0xd8] sm:$0xf0]  ;;  %s2158_s28 = smov 256   ;;  %s2159_s29 = smov 16  }
   0xf   :  { %v2209_v24 = vpop.eup %2055  ;;  %475 = vmatpush.bf16.msra.mxu3 %v1673_v59  ;;  %494 = vmatpush.bf16.msrb.mxu0 %v1613_v1 }
  0x10   :  { %v144_v31 = vmul.f32 32.0, %v2209_v24  ;;  %513 = vmatpush.bf16.msrb.mxu1 %v1677_v6  ;;  %vm148_vm2 = vweird.f32 %v2209_v24 }
  0x12   :  { %v145_v41 = vsub.f32 1.0, %v144_v31 }
  0x1e   :  { %1544 = vmatmul.msk.bf16.gmra.mxu0 %vm65_vm1, %v1949_v9  ;;  %1546 = vmatmul.msk.bf16.gmra.mxu1 %vm65_vm1, %v1949_v9  ;;  %v1664_v9 = vld [vmem:[#allocation2 + $0xe0] sm:$0xf] }
  0x8b   :  { %v88_v10 = vpop.f32.mrf.mxu0  ;;  %v107_v11 = vpop.f32.mrf.mxu1 }
  0x8c   :  { %v89_v19 = vadd.f32 %v88_v10, %v43_v15  ;;  %v108_v25 = vadd.f32 %v107_v11, %v44_v17 }
  0x8e   :  { %v2213_v28 = vmax.f32 %v89_v19, 0.0  ;;  %v2220_v32 = vmax.f32 %v108_v25, 0.0  ;;  %v1602_v19 = vld [vmem:[#allocation2 + $0x68] sm:$0xf0] }
  0x8f   :  { %v1666_v25 = vld [vmem:[#allocation2 + $0xe8] sm:$0xf0] }
  0x90   :  { %v152_v35 = vmul.f32 %v2213_v28, %v2213_v28  ;;  %v153_v43 = vmul.f32 %v2220_v32, %v2220_v32 }
  0x93   :  { %v90_v12 = vpop.f32.mrf.mxu0  ;;  %v109_v13 = vpop.f32.mrf.mxu1 }
  0x94   :  { %v91_v18 = vadd.f32 %v90_v12, %v43_v15  ;;  %v110_v20 = vadd.f32 %v109_v13, %v44_v17  ;;  %v1601_v12 = vor.u32 %v1965_v8, %v1600_v7  ;;  %v1981_v13 = vld [vmem:[#allocation2 + $0xe4] sm:$0xf0]  ;;  %v1586_v8 = vld [vmem:[#allocation2 + $0x48] sm:$0xf0] }
  0x96   :  { %v2211_v27 = vmax.f32 %v91_v18, 0.0  ;;  %v2215_v29 = vmax.f32 %v110_v20, 0.0  ;;  %v1665_v18 = vor.u32 %v1981_v13, %v1664_v9  ;;  %v1980_v20 = vld [vmem:[#allocation2 + $0xe4] sm:$0xf]  ;;  %457 = vmatpush.bf16.msra.mxu2 %v1601_v12  ;;  %v1650_v13 = vld [vmem:[#allocation2 + $0xc8] sm:$0xf0] }
  0x97   :  { %v1976_v9 = vld [vmem:[#allocation2 + $0xc4] sm:$0xf] }
  0x98   :  { %v154_v34 = vmul.f32 %v2211_v27, %v2211_v27  ;;  %v155_v36 = vmul.f32 %v2215_v29, %v2215_v29  ;;  %v125_v38 = vadd.f32 %v2211_v27, %v2213_v28  ;;  %v134_v44 = vadd.f32 %v2215_v29, %v2220_v32  ;;  %476 = vmatpush.bf16.msra.mxu3 %v1665_v18  ;;  %v1640_v18 = vld [vmem:[#allocation2 + $0xb0] sm:$0xf] }
  0x9a   :  { %v160_v50 = vadd.f32 %v154_v34, %v152_v35  ;;  %v169_v56 = vadd.f32 %v155_v36, %v153_v43  ;;  %v1669_v34 = vor.u32 %v1980_v20, %v1666_v25  ;;  %v1592_v35 = vld [vmem:[#allocation2 + $0x50] sm:$0xf]  ;;  %v1963_v36 = vld [vmem:[#allocation2 + $0x54] sm:$0xf0]  ;;  %v1958_v25 = vld [vmem:[#allocation2 + $0x34] sm:$0xf] }
  0x9b   :  { %v93_v21 = vpop.f32.mrf.mxu0  ;;  %v112_v23 = vpop.f32.mrf.mxu1 }
  0x9c   :  { %v94_v22 = vadd.f32 %v93_v21, %v43_v15  ;;  %v113_v26 = vadd.f32 %v112_v23, %v44_v17  ;;  %v1605_v23 = vor.u32 %v1964_v14, %v1602_v19  ;;  %514 = vmatpush.bf16.msrb.mxu1 %v1669_v34  ;;  %v1576_v14 = vld [vmem:[#allocation2 + $0x30] sm:$0xf]  ;;  %v1975_v19 = vld [vmem:[#allocation2 + $0xb4] sm:$0xf0] }
  0x9e   :  { %v2217_v30 = vmax.f32 %v94_v22, 0.0  ;;  %v2222_v33 = vmax.f32 %v113_v26, 0.0  ;;  %495 = vmatpush.bf16.msrb.mxu0 %v1605_v23  ;;  %v1641_v23 = vor.u32 %v1975_v19, %v1640_v18  ;;  %v1968_v18 = vld [vmem:[#allocation2 + $0x84] sm:$0xf]  ;;  %v1618_v19 = vld [vmem:[#allocation2 + $0x88] sm:$0xf0] }
  0xa0   :  { %v156_v39 = vmul.f32 %v2217_v30, %v2217_v30  ;;  %v157_v45 = vmul.f32 %v2222_v33, %v2222_v33  ;;  %v126_v51 = vadd.f32 %v125_v38, %v2217_v30  ;;  %v135_v57 = vadd.f32 %v134_v44, %v2222_v33 }
  0xa2   :  { %v161_v62 = vadd.f32 %v160_v50, %v156_v39  ;;  %v170_v3 = vadd.f32 %v169_v56, %v157_v45  ;;  %v1593_v39 = vor.u32 %v1963_v36, %v1592_v35 }
  0xa3   :  { %v95_v37 = vpop.f32.mrf.mxu0  ;;  %v114_v42 = vpop.f32.mrf.mxu1 }
  0xa4   :  { %v96_v40 = vadd.f32 %v95_v37, %v43_v15  ;;  %v115_v46 = vadd.f32 %v114_v42, %v44_v17  ;;  %v146_v15 = vmul.f32 %v2209_v24, %v145_v41  ;;  %v1979_v41 = vld [vmem:[#allocation2 + $0xd4] sm:$0xf0]  ;;  %458 = vmatpush.bf16.msra.mxu2 %v1593_v39 }
  0xa6   :  { %v2241_v52 = vmax.f32 %v96_v40, 0.0  ;;  %v2244_v58 = vmax.f32 %v115_v46, 0.0  ;;  %v1656_v40 = vld [vmem:[#allocation2 + $0xd0] sm:$0xf]  ;;  %v147_v42 = vadd.f32 %v2209_v24, %v146_v15  ;;  %v1962_v46 = vld [vmem:[#allocation2 + $0x54] sm:$0xf] }
  0xa7   :  { %v1657_v45 = vor.u32 %v1979_v41, %v1656_v40  ;;  %v1597_v50 = vor.u32 %v1962_v46, %v1594_v47  ;;  %v1568_v41 = vld [vmem:[#allocation2 + $0x20] sm:$0xf]  ;;  %v1973_v46 = vld [vmem:[#allocation2 + $0xa4] sm:$0xf0]  ;;  %v1956_v47 = vld [vmem:[#allocation2 + $0x24] sm:$0xf] }
  0xa8   :  { %v127_v63 = vadd.f32 %v126_v51, %v2241_v52  ;;  %v158_v0 = vmul.f32 %v2241_v52, %v2241_v52  ;;  %v136_v4 = vadd.f32 %v135_v57, %v2244_v58  ;;  %v159_v5 = vmul.f32 %v2244_v58, %v2244_v58  ;;  %v1978_v51 = vld [vmem:[#allocation2 + $0xd4] sm:$0xf]  ;;  %v1584_v57 = vld [vmem:[#allocation2 + $0x40] sm:$0xf] }
  0xa9   :  { %477 = vmatpush.bf16.msra.mxu3 %v1657_v45  ;;  %v1661_v56 = vor.u32 %v1978_v51, %v1658_v53  ;;  %496 = vmatpush.bf16.msrb.mxu0 %v1597_v50  ;;  %v1585_v2 = vor.u32 %v1961_v61, %v1584_v57  ;;  %v1972_v53 = vld [vmem:[#allocation2 + $0xa4] sm:$0xf]  ;;  %v1560_v57 = vld [vmem:[#allocation2 + $0x10] sm:$0xf] }
  0xaa   :  { %v128_v10 = vrot.slane %v127_v63, 4  ;;  %v162_v11 = vadd.f32 %v161_v62, %v158_v0  ;;  %v137_v16 = vrot.slane %v136_v4, 4  ;;  %v171_v17 = vadd.f32 %v170_v3, %v159_v5  ;;  %v1648_v62 = vld [vmem:[#allocation2 + $0xc0] sm:$0xf]  ;;  %v1977_v3 = vld [vmem:[#allocation2 + $0xc4] sm:$0xf0] }
  0xab   :  { %515 = vmatpush.bf16.msrb.mxu1 %v1661_v56  ;;  %v1649_v7 = vor.u32 %v1977_v3, %v1648_v62  ;;  %459 = vmatpush.bf16.msra.mxu2 %v1585_v2  ;;  %v1624_v62 = vld [vmem:[#allocation2 + $0x90] sm:$0xf]  ;;  %v1954_v3 = vld [vmem:[#allocation2 + $0x14] sm:$0xf] }
  0xac   :  { %v129_v21 = vadd.f32 %v128_v10, %v127_v63  ;;  %v163_v22 = vrot.slane %v162_v11, 4  ;;  %v138_v26 = vadd.f32 %v137_v16, %v136_v4  ;;  %v172_v31 = vrot.slane %v171_v17, 4  ;;  %v1960_v4 = vld [vmem:[#allocation2 + $0x44] sm:$0xf] }
  0xad   :  { %v2258_v63 = vsel %vm148_vm2, %v2209_v24, %v147_v42  ;;  %v1589_v12 = vor.u32 %v1960_v4, %v1586_v8  ;;  %478 = vmatpush.bf16.msra.mxu3 %v1649_v7  ;;  %v1653_v16 = vor.u32 %v1976_v9, %v1650_v13  ;;  %v1957_v42 = vld [vmem:[#allocation2 + $0x24] sm:$0xf0]  ;;  %v1562_v4 = vld [vmem:[#allocation2 + $0x18] sm:$0xf0]  ;;  %v1970_v7 = vld [vmem:[#allocation2 + $0x94] sm:$0xf] }
  0xae   :  { %v130_v37 = vrot.slane %v129_v21, 2  ;;  %v164_v38 = vadd.f32 %v163_v22, %v162_v11  ;;  %v139_v43 = vrot.slane %v138_v26, 2  ;;  %v173_v44 = vadd.f32 %v172_v31, %v171_v17  ;;  %v1959_v17 = vld [vmem:[#allocation2 + $0x34] sm:$0xf0]  ;;  %v1974_v31 = vld [vmem:[#allocation2 + $0xb4] sm:$0xf] }
  0xaf   :  { %497 = vmatpush.bf16.msrb.mxu0 %v1589_v12  ;;  %v1577_v22 = vor.u32 %v1959_v17, %v1576_v14  ;;  %516 = vmatpush.bf16.msrb.mxu1 %v1653_v16  ;;  %v1569_v45 = vor.u32 %v1957_v42, %v1568_v41  ;;  %v1626_v8 = vld [vmem:[#allocation2 + $0x98] sm:$0xf0]  ;;  %v1616_v12 = vld [vmem:[#allocation2 + $0x80] sm:$0xf]  ;;  %v1969_v14 = vld [vmem:[#allocation2 + $0x84] sm:$0xf0] }
  0xb0   :  { %v131_v48 = vadd.f32 %v130_v37, %v129_v21  ;;  %v165_v49 = vrot.slane %v164_v38, 2  ;;  %v140_v54 = vadd.f32 %v139_v43, %v138_v26  ;;  %v174_v55 = vrot.slane %v173_v44, 2  ;;  %v1578_v26 = vld [vmem:[#allocation2 + $0x38] sm:$0xf0]  ;;  %v1632_v43 = vld [vmem:[#allocation2 + $0xa0] sm:$0xf] }
  0xb1   :  { %v1581_v36 = vor.u32 %v1958_v25, %v1578_v26  ;;  %v1642_v37 = vld [vmem:[#allocation2 + $0xb8] sm:$0xf0]  ;;  %460 = vmatpush.bf16.msra.mxu2 %v1577_v22  ;;  %479 = vmatpush.bf16.msra.mxu3 %v1641_v23  ;;  %v1633_v50 = vor.u32 %v1973_v46, %v1632_v43  ;;  %v1629_v9 = vor.u32 %v1970_v7, %v1626_v8  ;;  %v1554_v16 = vld [vmem:[#allocation2 + $0x8] sm:$0xf0] }
  0xb2   :  { %v132_v59 = vrot.slane %v131_v48, 1  ;;  %v166_v60 = vadd.f32 %v165_v49, %v164_v38  ;;  %v141_v0 = vrot.slane %v140_v54, 1  ;;  %v175_v1 = vadd.f32 %v174_v55, %v173_v44  ;;  %v1547_v43 = vld [vmem:[%s2503_s3 + $0x3] ss:$8 sm:$0x3] }
  0xb3   :  { %v1645_v40 = vor.u32 %v1974_v31, %v1642_v37  ;;  %498 = vmatpush.bf16.msrb.mxu0 %v1581_v36  ;;  %v1617_v17 = vor.u32 %v1969_v14, %v1616_v12  ;;  %v1621_v22 = vor.u32 %v1968_v18, %v1618_v19 }
  0xb4   :  { %v133_v5 = vadd.f32 %v132_v59, %v131_v48  ;;  %v167_v6 = vrot.slane %v166_v60, 1  ;;  %v142_v10 = vadd.f32 %v141_v0, %v140_v54  ;;  %v176_v11 = vrot.slane %v175_v1, 1  ;;  %v1570_v48 = vld [vmem:[#allocation2 + $0x28] sm:$0xf0]  ;;  %v1955_v59 = vld [vmem:[#allocation2 + $0x14] sm:$0xf0] }
  0xb5   :  { %v1573_v51 = vor.u32 %v1956_v47, %v1570_v48  ;;  %v1634_v54 = vld [vmem:[#allocation2 + $0xa8] sm:$0xf0]  ;;  %517 = vmatpush.bf16.msrb.mxu1 %v1645_v40  ;;  %461 = vmatpush.bf16.msra.mxu2 %v1569_v45  ;;  %v1561_v61 = vor.u32 %v1955_v59, %v1560_v57  ;;  %v1971_v0 = vld [vmem:[#allocation2 + $0x94] sm:$0xf0] }
  0xb6   :  { %v2261_v24 = vmul.f32 %v2258_v63, %v133_v5  ;;  %v168_v15 = vadd.f32 %v167_v6, %v166_v60  ;;  %v2264_v20 = vmul.f32 %v2258_v63, %v142_v10  ;;  %v177_v21 = vadd.f32 %v176_v11, %v175_v1  ;;  %480 = vmatpush.bf16.msra.mxu3 %v1633_v50  ;;  %v1552_v10 = vld [vmem:[#allocation2] sm:$0xf]  ;;  %v1953_v11 = vld [vmem:[#allocation2 + $0x4] sm:$0xf0] }
  0xb7   :  { %v1637_v56 = vor.u32 %v1972_v53, %v1634_v54  ;;  %v1625_v2 = vor.u32 %v1971_v0, %v1624_v62  ;;  %499 = vmatpush.bf16.msrb.mxu0 %v1573_v51  ;;  %v1565_v6 = vor.u32 %v1954_v3, %v1562_v4  ;;  %v1553_v13 = vor.u32 %v1953_v11, %v1552_v10  ;;  %v1548_v53 = vld [vmem:[%s2503_s3 + $0x6] ss:$8 sm:$0x3]  ;;  %v1549_v11 = vld [vmem:[%s2503_s3 + $0x1] ss:$8 sm:$0x3] }
  0xb8   :  { %v178_v34 = vmul.f32 %v168_v15, %v2258_v63  ;;  %v180_v35 = vmul.f32 %v2261_v24, %v2261_v24  ;;  %v179_v38 = vmul.f32 %v177_v21, %v2258_v63  ;;  %v181_v39 = vmul.f32 %v2264_v20, %v2264_v20  ;;  %v1952_v15 = vld [vmem:[#allocation2 + $0x4] sm:$0xf] }
  0xb9   :  { %518 = vmatpush.bf16.msrb.mxu1 %v1637_v56  ;;  %462 = vmatpush.bf16.msra.mxu2 %v1561_v61  ;;  %v1557_v21 = vor.u32 %v1952_v15, %v1554_v16  ;;  %v293_v14 = vperm.slane %v1549_v11, 1  ;;  %v292_v19 = vperm.slane %v1549_v11, 0  ;;  %v1741_v11 = vld [vmem:[#allocation2 + $0x178] sm:$0xf0] }
  0xba   :  { %v182_v44 = vsub.f32 %v178_v34, %v180_v35  ;;  %v183_v49 = vsub.f32 %v179_v38, %v181_v39  ;;  %481 = vmatpush.bf16.msra.mxu3 %v1625_v2 }
  0xbb   :  { %500 = vmatpush.bf16.msrb.mxu0 %v1565_v6 }
  0xbc   :  { %v184_v55 = vmax.f32 %v182_v44, 0.0  ;;  %v185_v60 = vmax.f32 %v183_v49, 0.0 }
  0xbd   :  { %519 = vmatpush.bf16.msrb.mxu1 %v1629_v9  ;;  %463 = vmatpush.bf16.msra.mxu2 %v1553_v13 }
  0xbe   :  { %v188_v1 = vadd.f32 1e-05, %v184_v55  ;;  %v189_v5 = vadd.f32 1e-05, %v185_v60  ;;  %482 = vmatpush.bf16.msra.mxu3 %v1617_v17 }
  0xbf   :  { %501 = vmatpush.bf16.msrb.mxu0 %v1557_v21 }
  0xc0   :  { %2057 = vrsqrt.f32 %v188_v1  ;;  %vm206_vm5 = vweird.f32 %v189_v5  ;;  %vm196_vm7 = vweird.f32 %v188_v1 }
  0xc1   :  { %2059 = vrsqrt.f32 %v189_v5  ;;  %520 = vmatpush.bf16.msrb.mxu1 %v1621_v22 }
  0xc6   :  { %v2058_v23 = vpop.eup %2057 }
  0xc7   :  { %v2060_v25 = vpop.eup %2059  ;;  %v191_v26 = vmul.f32 %v2058_v23, %v188_v1  ;;  %vm197_vm4 = vweird.f32 %v2058_v23 }
  0xc8   :  { %v201_v31 = vmul.f32 %v2060_v25, %v189_v5  ;;  %vm207_vm3 = vweird.f32 %v2060_v25  ;;  %vm198_vm9 = vmor %vm196_vm7, %vm197_vm4 }
  0xc9   :  { %v192_v34 = vmul.f32 %v2058_v23, %v191_v26  ;;  %vm208_vm6 = vmor %vm206_vm5, %vm207_vm3 }
  0xca   :  { %v202_v35 = vmul.f32 %v2060_v25, %v201_v31 }
  0xcb   :  { %v193_v36 = vmul.f32 0.5, %v192_v34 }
  0xcc   :  { %v203_v37 = vmul.f32 0.5, %v202_v35 }
  0xcd   :  { %v194_v38 = vsub.f32 1.5, %v193_v36 }
  0xce   :  { %v204_v39 = vsub.f32 1.5, %v203_v37 }
  0xcf   :  { %v195_v40 = vmul.f32 %v2058_v23, %v194_v38 }
  0xd0   :  { %v205_v41 = vmul.f32 %v2060_v25, %v204_v39 }
  0xd1   :  { %v199_v45 = vsel %vm198_vm9, %v2058_v23, %v195_v40 }
  0xd2   :  { %v209_v42 = vsel %vm208_vm6, %v2060_v25, %v205_v41 }
  0xd3   :  { %v212_v44 = vrot.slane %v209_v42, 7 }
  0xd5   :  { %v214_v46 = vsel %vm213_vm8, %v199_v45, %v212_v44 }
  0xd6   :  { %v216_v47 = vmul.f32 %v1547_v43, %v214_v46 }
  0xd8   :  { %v221_v48 = vperm.slane %v216_v47, 1  ;;  %v220_v49 = vperm.slane %v216_v47, 0 }
  0xda   :  { %v225_v50 = vmul.f32 %v221_v48, %v2264_v20  ;;  %v224_v54 = vmul.f32 %v220_v49, %v2261_v24  ;;  %v232_v57 = vmul.f32 %v220_v49, %v2213_v28  ;;  %v234_v59 = vmul.f32 %v220_v49, %v2211_v27 }
  0xdb   :  { %v233_v61 = vmul.f32 %v221_v48, %v2220_v32  ;;  %v235_v62 = vmul.f32 %v221_v48, %v2215_v29  ;;  %v236_v0 = vmul.f32 %v220_v49, %v2217_v30  ;;  %v238_v1 = vmul.f32 %v220_v49, %v2241_v52 }
  0xdc   :  { %v228_v51 = vrot.slane %v225_v50, 7  ;;  %v237_v2 = vmul.f32 %v221_v48, %v2222_v33  ;;  %v239_v24 = vmul.f32 %v221_v48, %v2244_v58 }
  0xde   :  { %v229_v55 = vsel %vm213_vm8, %v224_v54, %v228_v51 }
  0xdf   :  { %v231_v56 = vsub.f32 %v1548_v53, %v229_v55 }
  0xe1   :  { %v241_v60 = vperm.slane %v231_v56, 0  ;;  %v242_v20 = vperm.slane %v231_v56, 1 }
  0xe3   :  { %v245_v3 = vadd.f32 %v241_v60, %v232_v57  ;;  %v247_v4 = vadd.f32 %v241_v60, %v234_v59  ;;  %v246_v5 = vadd.f32 %v242_v20, %v233_v61  ;;  %v248_v28 = vadd.f32 %v242_v20, %v235_v62 }
  0xe4   :  { %v249_v6 = vadd.f32 %v241_v60, %v236_v0  ;;  %v251_v27 = vadd.f32 %v241_v60, %v238_v1  ;;  %v250_v7 = vadd.f32 %v242_v20, %v237_v2  ;;  %v252_v8 = vadd.f32 %v242_v20, %v239_v24 }
  0xe5   :  { %v253_v32 = vpack.c.bf16 %v247_v4, %v245_v3  ;;  %v254_v9 = vpack.c.bf16 %v248_v28, %v246_v5 }
  0xe6   :  { %v255_v29 = vpack.c.bf16 %v251_v27, %v249_v6  ;;  %v256_v10 = vpack.c.bf16 %v252_v8, %v250_v7  ;;  %v1739_v6 = vld [vmem:[#allocation2 + $0x170] sm:$0xf]  ;;  %v1999_v27 = vld [vmem:[#allocation2 + $0x174] sm:$0xf0] }
  0xe7   :  { %464 = vmatmul.bf16.vlgmr.msra.gmra.mxu2 %v253_v32  ;;  %483 = vmatmul.bf16.vlgmr.msra.gmra.mxu3 %v254_v9  ;;  %v1803_v7 = vld [vmem:[#allocation2 + $0x1f0] sm:$0xf] }
  0xe8   :  { %502 = vmatmul.bf16.vlgmr.msrb.gmra.mxu0 %v253_v32  ;;  %521 = vmatmul.bf16.vlgmr.msrb.gmra.mxu1 %v254_v9  ;;  %v1740_v9 = vor.u32 %v1999_v27, %v1739_v6  ;;  %v2010_v6 = vld [vmem:[#allocation2 + $0x1d4] sm:$0xf] }
  0xea   :  { %864 = vmatpush.bf16.msrb.mxu2 %v1740_v9  ;;  %v1715_v9 = vld [vmem:[#allocation2 + $0x140] sm:$0xf] }
  0xf7   :  { %469 = vmatmul.bf16.gmra.mxu2 %v255_v29  ;;  %488 = vmatmul.bf16.gmra.mxu3 %v256_v10 }
  0xf8   :  { %507 = vmatmul.bf16.gmra.mxu0 %v255_v29  ;;  %526 = vmatmul.bf16.gmra.mxu1 %v256_v10  ;;  %v2015_v29 = vld [vmem:[#allocation2 + $0x1f4] sm:$0xf0]  ;;  %v1998_v10 = vld [vmem:[#allocation2 + $0x174] sm:$0xf] }
 0x165   :  { %v503_v30 = vpop.f32.mrf.mxu0  ;;  %v522_v33 = vpop.f32.mrf.mxu1 }
 0x166   :  { %v504_v18 = vadd.f32 %v503_v30, %v293_v14 }
 0x168   :  { %v523_v31 = vadd.f32 %v522_v33, %v504_v18 }
 0x16a   :  { %v465_v52 = vpop.f32.mrf.mxu2  ;;  %v484_v58 = vpop.f32.mrf.mxu3  ;;  %v2295_v41 = vmax.f32 %v523_v31, 0.0 }
 0x16b   :  { %v466_v35 = vadd.f32 %v465_v52, %v292_v19 }
 0x16c   :  { %v561_v50 = vmul.f32 %v2295_v41, %v2295_v41 }
 0x16d   :  { %v505_v12 = vpop.f32.mrf.mxu0  ;;  %v524_v13 = vpop.f32.mrf.mxu1  ;;  %v485_v43 = vadd.f32 %v484_v58, %v466_v35  ;;  %v1804_v58 = vor.u32 %v2015_v29, %v1803_v7  ;;  %v2013_v35 = vld [vmem:[#allocation2 + $0x1e4] sm:$0xf0] }
 0x16e   :  { %v506_v15 = vadd.f32 %v505_v12, %v293_v14  ;;  %v2014_v12 = vld [vmem:[#allocation2 + $0x1f4] sm:$0xf] }
 0x16f   :  { %v2309_v55 = vmax.f32 %v485_v43, 0.0  ;;  %883 = vmatpush.bf16.msrb.mxu3 %v1804_v58  ;;  %v1733_v43 = vld [vmem:[#allocation2 + $0x168] sm:$0xf0]  ;;  %v1779_v58 = vld [vmem:[#allocation2 + $0x1c0] sm:$0xf] }
 0x170   :  { %v525_v23 = vadd.f32 %v524_v13, %v506_v15  ;;  %v1744_v15 = vor.u32 %v1998_v10, %v1741_v11  ;;  %v2009_v11 = vld [vmem:[#allocation2 + $0x1c4] sm:$0xf0] }
 0x171   :  { %v560_v3 = vmul.f32 %v2309_v55, %v2309_v55 }
 0x172   :  { %v467_v16 = vpop.f32.mrf.mxu2  ;;  %v486_v17 = vpop.f32.mrf.mxu3  ;;  %v2293_v36 = vmax.f32 %v525_v23, 0.0  ;;  %v1997_v23 = vld [vmem:[#allocation2 + $0x164] sm:$0xf0]  ;;  %902 = vmatpush.bf16.msra.mxu0 %v1744_v15  ;;  %v1780_v15 = vor.u32 %v2009_v11, %v1779_v58  ;;  %v1693_v11 = vld [vmem:[#allocation2 + $0x118] sm:$0xf0] }
 0x173   :  { %v468_v26 = vadd.f32 %v467_v16, %v292_v19  ;;  %v1805_v16 = vld [vmem:[#allocation2 + $0x1f8] sm:$0xf0] }
 0x174   :  { %v563_v46 = vmul.f32 %v2293_v36, %v2293_v36  ;;  %v549_v51 = vadd.f32 %v2293_v36, %v2295_v41 }
 0x175   :  { %v508_v21 = vpop.f32.mrf.mxu0  ;;  %v527_v22 = vpop.f32.mrf.mxu1  ;;  %v487_v39 = vadd.f32 %v486_v17, %v468_v26 }
 0x176   :  { %v509_v25 = vadd.f32 %v508_v21, %v293_v14  ;;  %v577_v57 = vadd.f32 %v563_v46, %v561_v50  ;;  %v1808_v21 = vor.u32 %v2014_v12, %v1805_v16  ;;  %v1992_v16 = vld [vmem:[#allocation2 + $0x144] sm:$0xf] }
 0x177   :  { %v2301_v48 = vmax.f32 %v487_v39, 0.0 }
 0x178   :  { %v528_v34 = vadd.f32 %v527_v22, %v509_v25  ;;  %v1731_v22 = vld [vmem:[#allocation2 + $0x160] sm:$0xf]  ;;  %921 = vmatpush.bf16.msra.mxu1 %v1808_v21 }
 0x179   :  { %v562_v62 = vmul.f32 %v2301_v48, %v2301_v48  ;;  %v540_v4 = vadd.f32 %v2301_v48, %v2309_v55  ;;  %v1795_v25 = vld [vmem:[#allocation2 + $0x1e0] sm:$0xf] }
 0x17a   :  { %v470_v37 = vpop.f32.mrf.mxu2  ;;  %v489_v38 = vpop.f32.mrf.mxu3  ;;  %v2297_v42 = vmax.f32 %v528_v34, 0.0  ;;  %v1732_v34 = vor.u32 %v1997_v23, %v1731_v22  ;;  %v2008_v22 = vld [vmem:[#allocation2 + $0x1c4] sm:$0xf]  ;;  %v1781_v23 = vld [vmem:[#allocation2 + $0x1c8] sm:$0xf0] }
 0x17b   :  { %v471_v40 = vadd.f32 %v470_v37, %v292_v19  ;;  %v568_v30 = vadd.f32 %v562_v62, %v560_v3  ;;  %v1996_v37 = vld [vmem:[#allocation2 + $0x164] sm:$0xf] }
 0x17c   :  { %v565_v53 = vmul.f32 %v2297_v42, %v2297_v42  ;;  %v550_v59 = vadd.f32 %v549_v51, %v2297_v42  ;;  %865 = vmatpush.bf16.msrb.mxu2 %v1732_v34  ;;  %v1707_v34 = vld [vmem:[#allocation2 + $0x130] sm:$0xf] }
 0x17d   :  { %v490_v44 = vadd.f32 %v489_v38, %v471_v40  ;;  %v510_v45 = vpop.f32.mrf.mxu0  ;;  %v529_v49 = vpop.f32.mrf.mxu1  ;;  %v1796_v40 = vor.u32 %v2013_v35, %v1795_v25  ;;  %v1991_v35 = vld [vmem:[#allocation2 + $0x134] sm:$0xf0] }
 0x17e   :  { %v511_v47 = vadd.f32 %v510_v45, %v293_v14  ;;  %v578_v0 = vadd.f32 %v577_v57, %v565_v53  ;;  %v1995_v57 = vld [vmem:[#allocation2 + $0x154] sm:$0xf0] }
 0x17f   :  { %v2311_v56 = vmax.f32 %v490_v44, 0.0  ;;  %v2012_v44 = vld [vmem:[#allocation2 + $0x1e4] sm:$0xf]  ;;  %884 = vmatpush.bf16.msrb.mxu3 %v1796_v40  ;;  %v2007_v40 = vld [vmem:[#allocation2 + $0x1b4] sm:$0xf0] }
 0x180   :  { %v530_v54 = vadd.f32 %v529_v49, %v511_v47  ;;  %v1736_v47 = vor.u32 %v1996_v37, %v1733_v43  ;;  %v1797_v49 = vld [vmem:[#allocation2 + $0x1e8] sm:$0xf0]  ;;  %v1990_v43 = vld [vmem:[#allocation2 + $0x134] sm:$0xf] }
 0x181   :  { %v564_v5 = vmul.f32 %v2311_v56, %v2311_v56  ;;  %v541_v33 = vadd.f32 %v540_v4, %v2311_v56  ;;  %v1800_v53 = vor.u32 %v2012_v44, %v1797_v49  ;;  %v2006_v49 = vld [vmem:[#allocation2 + $0x1b4] sm:$0xf] }
 0x182   :  { %v2314_v60 = vmax.f32 %v530_v54, 0.0  ;;  %v472_v61 = vpop.f32.mrf.mxu2  ;;  %v491_v24 = vpop.f32.mrf.mxu3  ;;  %v1723_v54 = vld [vmem:[#allocation2 + $0x150] sm:$0xf]  ;;  %903 = vmatpush.bf16.msra.mxu0 %v1736_v47  ;;  %v1709_v47 = vld [vmem:[#allocation2 + $0x138] sm:$0xf0] }
 0x183   :  { %v473_v20 = vadd.f32 %v472_v61, %v292_v19  ;;  %v569_v17 = vadd.f32 %v568_v30, %v564_v5  ;;  %v1724_v62 = vor.u32 %v1995_v57, %v1723_v54  ;;  %922 = vmatpush.bf16.msra.mxu1 %v1800_v53  ;;  %v1712_v53 = vor.u32 %v1990_v43, %v1709_v47  ;;  %v1699_v57 = vld [vmem:[#allocation2 + $0x120] sm:$0xf] }
 0x184   :  { %v551_v1 = vadd.f32 %v550_v59, %v2314_v60  ;;  %v567_v2 = vmul.f32 %v2314_v60, %v2314_v60 }
 0x185   :  { %v492_v28 = vadd.f32 %v491_v24, %v473_v20  ;;  %v1787_v20 = vld [vmem:[#allocation2 + $0x1d0] sm:$0xf]  ;;  %v1994_v24 = vld [vmem:[#allocation2 + $0x154] sm:$0xf]  ;;  %866 = vmatpush.bf16.msrb.mxu2 %v1724_v62 }
 0x186   :  { %v552_v8 = vrot.slane %v551_v1, 4  ;;  %v579_v32 = vadd.f32 %v578_v0, %v567_v2  ;;  %v2011_v2 = vld [vmem:[#allocation2 + $0x1d4] sm:$0xf0] }
 0x187   :  { %v2328_v52 = vmax.f32 %v492_v28, 0.0  ;;  %v1788_v5 = vor.u32 %v2011_v2, %v1787_v20  ;;  %v1725_v28 = vld [vmem:[#allocation2 + $0x158] sm:$0xf0]  ;;  %v1988_v2 = vld [vmem:[#allocation2 + $0x124] sm:$0xf] }
 0x188   :  { %v553_v13 = vadd.f32 %v552_v8, %v551_v1  ;;  %v580_v14 = vrot.slane %v579_v32, 4  ;;  %v1728_v8 = vor.u32 %v1994_v24, %v1725_v28 }
 0x189   :  { %v542_v18 = vadd.f32 %v541_v33, %v2328_v52  ;;  %v566_v19 = vmul.f32 %v2328_v52, %v2328_v52  ;;  %885 = vmatpush.bf16.msrb.mxu3 %v1788_v5  ;;  %v1993_v33 = vld [vmem:[#allocation2 + $0x144] sm:$0xf0]  ;;  %v2004_v5 = vld [vmem:[#allocation2 + $0x1a4] sm:$0xf] }
 0x18a   :  { %v554_v26 = vrot.slane %v553_v13, 2  ;;  %v581_v31 = vadd.f32 %v580_v14, %v579_v32  ;;  %v1789_v32 = vld [vmem:[#allocation2 + $0x1d8] sm:$0xf0]  ;;  %904 = vmatpush.bf16.msra.mxu0 %v1728_v8  ;;  %v1716_v14 = vor.u32 %v1993_v33, %v1715_v9  ;;  %v1987_v8 = vld [vmem:[#allocation2 + $0x114] sm:$0xf0] }
 0x18b   :  { %v543_v38 = vrot.slane %v542_v18, 4  ;;  %v570_v39 = vadd.f32 %v569_v17, %v566_v19  ;;  %v1792_v30 = vor.u32 %v2010_v6, %v1789_v32  ;;  %v1717_v17 = vld [vmem:[#allocation2 + $0x148] sm:$0xf0]  ;;  %v1755_v9 = vld [vmem:[#allocation2 + $0x190] sm:$0xf] }
 0x18c   :  { %v555_v45 = vadd.f32 %v554_v26, %v553_v13  ;;  %v582_v46 = vrot.slane %v581_v31, 2  ;;  %v1720_v21 = vor.u32 %v1992_v16, %v1717_v17  ;;  %867 = vmatpush.bf16.msrb.mxu2 %v1716_v14  ;;  %v1757_v14 = vld [vmem:[#allocation2 + $0x198] sm:$0xf0]  ;;  %v1985_v16 = vld [vmem:[#allocation2 + $0x104] sm:$0xf0] }
 0x18d   :  { %v544_v50 = vadd.f32 %v543_v38, %v542_v18  ;;  %v571_v51 = vrot.slane %v570_v39, 4  ;;  %923 = vmatpush.bf16.msra.mxu1 %v1792_v30  ;;  %886 = vmatpush.bf16.msrb.mxu3 %v1780_v15  ;;  %v1708_v38 = vor.u32 %v1991_v35, %v1707_v34  ;;  %v1986_v30 = vld [vmem:[#allocation2 + $0x114] sm:$0xf]  ;;  %v1683_v15 = vld [vmem:[#allocation2 + $0x100] sm:$0xf] }
 0x18e   :  { %v556_v59 = vrot.slane %v555_v45, 1  ;;  %v583_v61 = vadd.f32 %v582_v46, %v581_v31  ;;  %v1784_v31 = vor.u32 %v2008_v22, %v1781_v23  ;;  %905 = vmatpush.bf16.msra.mxu0 %v1720_v21  ;;  %v2001_v21 = vld [vmem:[#allocation2 + $0x184] sm:$0xf0]  ;;  %v1984_v23 = vld [vmem:[#allocation2 + $0x104] sm:$0xf] }
 0x18f   :  { %v545_v0 = vrot.slane %v544_v50, 2  ;;  %v572_v1 = vadd.f32 %v571_v51, %v570_v39  ;;  %v1771_v39 = vld [vmem:[#allocation2 + $0x1b0] sm:$0xf]  ;;  %v1749_v34 = vld [vmem:[#allocation2 + $0x188] sm:$0xf0] }
 0x190   :  { %v557_v3 = vadd.f32 %v556_v59, %v555_v45  ;;  %v584_v4 = vrot.slane %v583_v61, 1  ;;  %v1772_v46 = vor.u32 %v2007_v40, %v1771_v39  ;;  %v1989_v59 = vld [vmem:[#allocation2 + $0x124] sm:$0xf0]  ;;  %868 = vmatpush.bf16.msrb.mxu2 %v1708_v38 }
 0x191   :  { %v546_v27 = vadd.f32 %v545_v0, %v544_v50  ;;  %v573_v7 = vrot.slane %v572_v1, 2  ;;  %v1773_v50 = vld [vmem:[#allocation2 + $0x1b8] sm:$0xf0]  ;;  %924 = vmatpush.bf16.msra.mxu1 %v1784_v31  ;;  %v1700_v20 = vor.u32 %v1989_v59, %v1699_v57  ;;  %v1763_v0 = vld [vmem:[#allocation2 + $0x1a0] sm:$0xf] }
 0x192   :  { %v2334_v29 = vmul.f32 %v557_v3, %v2258_v63  ;;  %v585_v10 = vadd.f32 %v584_v4, %v583_v61  ;;  %v1776_v54 = vor.u32 %v2006_v49, %v1773_v50  ;;  %887 = vmatpush.bf16.msrb.mxu3 %v1772_v46  ;;  %v1701_v4 = vld [vmem:[#allocation2 + $0x128] sm:$0xf0]  ;;  %906 = vmatpush.bf16.msra.mxu0 %v1712_v53  ;;  %v2000_v31 = vld [vmem:[#allocation2 + $0x184] sm:$0xf] }
 0x193   :  { %v547_v12 = vrot.slane %v546_v27, 1  ;;  %v574_v13 = vadd.f32 %v573_v7, %v572_v1  ;;  %v2005_v1 = vld [vmem:[#allocation2 + $0x1a4] sm:$0xf0]  ;;  %v1704_v6 = vor.u32 %v1988_v2, %v1701_v4  ;;  %v1691_v7 = vld [vmem:[#allocation2 + $0x110] sm:$0xf]  ;;  %v1752_v40 = vor.u32 %v2000_v31, %v1749_v34 }
 0x194   :  { %v587_v18 = vmul.f32 %v585_v10, %v2258_v63  ;;  %v589_v19 = vmul.f32 %v2334_v29, %v2334_v29  ;;  %v1764_v3 = vor.u32 %v2005_v1, %v1763_v0  ;;  %v2003_v10 = vld [vmem:[#allocation2 + $0x194] sm:$0xf0]  ;;  %869 = vmatpush.bf16.msrb.mxu2 %v1700_v20  ;;  %v1692_v58 = vor.u32 %v1987_v8, %v1691_v7 }
 0x195   :  { %v548_v25 = vadd.f32 %v547_v12, %v546_v27  ;;  %v575_v26 = vrot.slane %v574_v13, 1  ;;  %v1765_v27 = vld [vmem:[#allocation2 + $0x1a8] sm:$0xf0]  ;;  %925 = vmatpush.bf16.msra.mxu1 %v1776_v54  ;;  %v2002_v12 = vld [vmem:[#allocation2 + $0x194] sm:$0xf] }
 0x196   :  { %v591_v37 = vsub.f32 %v587_v18, %v589_v19  ;;  %v1768_v32 = vor.u32 %v2004_v5, %v1765_v27  ;;  %888 = vmatpush.bf16.msrb.mxu3 %v1764_v3  ;;  %907 = vmatpush.bf16.msra.mxu0 %v1704_v6  ;;  %v1696_v18 = vor.u32 %v1986_v30, %v1693_v11  ;;  %v1747_v19 = vld [vmem:[#allocation2 + $0x180] sm:$0xf]  ;;  %v1679_v5 = vld [vmem:[%s2503_s3 + $0x7] ss:$8 sm:$0x3] }
 0x197   :  { %v2340_v44 = vmul.f32 %v548_v25, %v2258_v63  ;;  %v576_v45 = vadd.f32 %v575_v26, %v574_v13  ;;  %v1756_v13 = vor.u32 %v2003_v10, %v1755_v9  ;;  %v1760_v22 = vor.u32 %v2002_v12, %v1757_v14  ;;  %v1685_v25 = vld [vmem:[#allocation2 + $0x108] sm:$0xf0] }
 0x198   :  { %v593_v51 = vmax.f32 %v591_v37, 0.0  ;;  %870 = vmatpush.bf16.msrb.mxu2 %v1692_v58  ;;  %v1684_v26 = vor.u32 %v1985_v16, %v1683_v15  ;;  %v1748_v37 = vor.u32 %v2001_v21, %v1747_v19  ;;  %v1688_v39 = vor.u32 %v1984_v23, %v1685_v25  ;;  %v1680_v19 = vld [vmem:[%s2503_s3 + $0x2] ss:$8 sm:$0x3] }
 0x199   :  { %v586_v61 = vmul.f32 %v576_v45, %v2258_v63  ;;  %v588_v62 = vmul.f32 %v2340_v44, %v2340_v44  ;;  %926 = vmatpush.bf16.msra.mxu1 %v1768_v32  ;;  %v701_v23 = vperm.slane %v1680_v19, 1 }
 0x19a   :  { %v2345_v24 = vadd.f32 1e-05, %v593_v51  ;;  %889 = vmatpush.bf16.msrb.mxu3 %v1756_v13  ;;  %908 = vmatpush.bf16.msra.mxu0 %v1696_v18 }
 0x19b   :  { %v590_v28 = vsub.f32 %v586_v61, %v588_v62  ;;  %v1678_v62 = vld [vmem:[%s2503_s3 + $0x4] ss:$8 sm:$0x3] }
 0x19c   :  { %2061 = vrsqrt.f32 %v2345_v24  ;;  %871 = vmatpush.bf16.msrb.mxu2 %v1684_v26  ;;  %vm614_vm11 = vweird.f32 %v2345_v24 }
 0x19d   :  { %v592_v33 = vmax.f32 %v590_v28, 0.0  ;;  %927 = vmatpush.bf16.msra.mxu1 %v1760_v22 }
 0x19e   :  { %890 = vmatpush.bf16.msrb.mxu3 %v1748_v37  ;;  %909 = vmatpush.bf16.msra.mxu0 %v1688_v39 }
 0x19f   :  { %v596_v17 = vadd.f32 1e-05, %v592_v33 }
 0x1a1   :  { %2063 = vrsqrt.f32 %v596_v17  ;;  %928 = vmatpush.bf16.msra.mxu1 %v1752_v40  ;;  %vm604_vm14 = vweird.f32 %v596_v17 }
 0x1a2   :  { %v2062_v35 = vpop.eup %2061 }
 0x1a3   :  { %v609_v38 = vmul.f32 %v2062_v35, %v2345_v24  ;;  %vm615_vm10 = vweird.f32 %v2062_v35 }
 0x1a4   :  { %vm616_vm12 = vmor %vm614_vm11, %vm615_vm10 }
 0x1a5   :  { %v610_v43 = vmul.f32 %v2062_v35, %v609_v38 }
 0x1a7   :  { %v2064_v45 = vpop.eup %2063  ;;  %v611_v46 = vmul.f32 0.5, %v610_v43 }
 0x1a8   :  { %v599_v47 = vmul.f32 %v2064_v45, %v596_v17  ;;  %vm605_vm13 = vweird.f32 %v2064_v45 }
 0x1a9   :  { %v612_v49 = vsub.f32 1.5, %v611_v46  ;;  %vm606_vm15 = vmor %vm604_vm14, %vm605_vm13 }
 0x1aa   :  { %v600_v50 = vmul.f32 %v2064_v45, %v599_v47 }
 0x1ab   :  { %v613_v51 = vmul.f32 %v2062_v35, %v612_v49 }
 0x1ac   :  { %v601_v53 = vmul.f32 0.5, %v600_v50 }
 0x1ad   :  { %v617_v54 = vsel %vm616_vm12, %v2062_v35, %v613_v51  ;;  %v700_v35 = vperm.slane %v1680_v19, 0  ;;  %v1872_v19 = vld [vmem:[#allocation2 + $0x278] sm:$0xf0] }
 0x1ae   :  { %v602_v57 = vsub.f32 1.5, %v601_v53  ;;  %v620_v61 = vrot.slane %v617_v54, 7 }
 0x1b0   :  { %v603_v59 = vmul.f32 %v2064_v45, %v602_v57 }
 0x1b2   :  { %v607_v20 = vsel %vm606_vm15, %v2064_v45, %v603_v59 }
 0x1b3   :  { %v621_v0 = vsel %vm213_vm8, %v607_v20, %v620_v61 }
 0x1b4   :  { %v623_v1 = vmul.f32 %v1678_v62, %v621_v0 }
 0x1b6   :  { %v627_v2 = vperm.slane %v623_v1, 0  ;;  %v628_v3 = vperm.slane %v623_v1, 1 }
 0x1b8   :  { %v632_v24 = vmul.f32 %v628_v3, %v2334_v29  ;;  %v631_v4 = vmul.f32 %v627_v2, %v2340_v44  ;;  %v639_v7 = vmul.f32 %v627_v2, %v2309_v55  ;;  %v641_v8 = vmul.f32 %v627_v2, %v2301_v48 }
 0x1b9   :  { %v640_v9 = vmul.f32 %v628_v3, %v2295_v41  ;;  %v642_v10 = vmul.f32 %v628_v3, %v2293_v36  ;;  %v643_v44 = vmul.f32 %v627_v2, %v2311_v56  ;;  %v645_v30 = vmul.f32 %v627_v2, %v2328_v52 }
 0x1ba   :  { %v635_v28 = vrot.slane %v632_v24, 7  ;;  %v644_v33 = vmul.f32 %v628_v3, %v2297_v42  ;;  %v646_v58 = vmul.f32 %v628_v3, %v2314_v60 }
 0x1bc   :  { %v636_v6 = vsel %vm213_vm8, %v631_v4, %v635_v28 }
 0x1bd   :  { %v638_v27 = vsub.f32 %v1679_v5, %v636_v6 }
 0x1bf   :  { %v648_v32 = vperm.slane %v638_v27, 0  ;;  %v649_v29 = vperm.slane %v638_v27, 1 }
 0x1c1   :  { %v652_v11 = vadd.f32 %v648_v32, %v639_v7  ;;  %v654_v12 = vadd.f32 %v648_v32, %v641_v8  ;;  %v653_v13 = vadd.f32 %v649_v29, %v640_v9  ;;  %v655_v55 = vadd.f32 %v649_v29, %v642_v10 }
 0x1c2   :  { %v656_v14 = vadd.f32 %v648_v32, %v643_v44  ;;  %v658_v48 = vadd.f32 %v648_v32, %v645_v30  ;;  %v657_v15 = vadd.f32 %v649_v29, %v644_v33  ;;  %v659_v16 = vadd.f32 %v649_v29, %v646_v58 }
 0x1c3   :  { %v660_v41 = vpack.c.bf16 %v654_v12, %v652_v11  ;;  %v661_v17 = vpack.c.bf16 %v655_v55, %v653_v13 }
 0x1c4   :  { %v662_v36 = vpack.c.bf16 %v658_v48, %v656_v14  ;;  %v663_v18 = vpack.c.bf16 %v659_v16, %v657_v15  ;;  %v1870_v14 = vld [vmem:[#allocation2 + $0x270] sm:$0xf]  ;;  %v2031_v48 = vld [vmem:[#allocation2 + $0x274] sm:$0xf0] }
 0x1c5   :  { %872 = vmatmul.bf16.vlgmr.msrb.gmra.mxu2 %v660_v41  ;;  %891 = vmatmul.bf16.vlgmr.msrb.gmra.mxu3 %v661_v17  ;;  %v1934_v15 = vld [vmem:[#allocation2 + $0x2f0] sm:$0xf] }
 0x1c6   :  { %910 = vmatmul.bf16.vlgmr.msra.gmra.mxu0 %v660_v41  ;;  %929 = vmatmul.bf16.vlgmr.msra.gmra.mxu1 %v661_v17  ;;  %v1871_v17 = vor.u32 %v2031_v48, %v1870_v14  ;;  %v2042_v14 = vld [vmem:[#allocation2 + $0x2d4] sm:$0xf] }
 0x1c8   :  { %1272 = vmatpush.bf16.msra.mxu2 %v1871_v17  ;;  %v1846_v17 = vld [vmem:[#allocation2 + $0x240] sm:$0xf] }
 0x1d5   :  { %877 = vmatmul.bf16.gmra.mxu2 %v662_v36  ;;  %896 = vmatmul.bf16.gmra.mxu3 %v663_v18 }
 0x1d6   :  { %915 = vmatmul.bf16.gmra.mxu0 %v662_v36  ;;  %934 = vmatmul.bf16.gmra.mxu1 %v663_v18  ;;  %v2047_v36 = vld [vmem:[#allocation2 + $0x2f4] sm:$0xf0]  ;;  %v2030_v18 = vld [vmem:[#allocation2 + $0x274] sm:$0xf] }
 0x243   :  { %v911_v42 = vpop.f32.mrf.mxu0  ;;  %v930_v56 = vpop.f32.mrf.mxu1 }
 0x244   :  { %v912_v34 = vadd.f32 %v911_v42, %v701_v23 }
 0x246   :  { %v931_v45 = vadd.f32 %v930_v56, %v912_v34 }
 0x248   :  { %v873_v60 = vpop.f32.mrf.mxu2  ;;  %v892_v52 = vpop.f32.mrf.mxu3  ;;  %v2373_v57 = vmax.f32 %v931_v45, 0.0 }
 0x249   :  { %v874_v47 = vadd.f32 %v873_v60, %v700_v35 }
 0x24a   :  { %v969_v24 = vmul.f32 %v2373_v57, %v2373_v57 }
 0x24b   :  { %v913_v21 = vpop.f32.mrf.mxu0  ;;  %v932_v22 = vpop.f32.mrf.mxu1  ;;  %v893_v61 = vadd.f32 %v892_v52, %v874_v47  ;;  %v1935_v52 = vor.u32 %v2047_v36, %v1934_v15  ;;  %v2045_v47 = vld [vmem:[#allocation2 + $0x2e4] sm:$0xf0] }
 0x24c   :  { %v914_v25 = vadd.f32 %v913_v21, %v701_v23  ;;  %v2046_v21 = vld [vmem:[#allocation2 + $0x2f4] sm:$0xf] }
 0x24d   :  { %v2387_v6 = vmax.f32 %v893_v61, 0.0  ;;  %1291 = vmatpush.bf16.msra.mxu3 %v1935_v52  ;;  %v1864_v61 = vld [vmem:[#allocation2 + $0x268] sm:$0xf0]  ;;  %v1910_v52 = vld [vmem:[#allocation2 + $0x2c0] sm:$0xf] }
 0x24e   :  { %v933_v39 = vadd.f32 %v932_v22, %v914_v25  ;;  %v1875_v25 = vor.u32 %v2030_v18, %v1872_v19  ;;  %v2041_v19 = vld [vmem:[#allocation2 + $0x2c4] sm:$0xf0] }
 0x24f   :  { %v968_v11 = vmul.f32 %v2387_v6, %v2387_v6 }
 0x250   :  { %v875_v26 = vpop.f32.mrf.mxu2  ;;  %v894_v31 = vpop.f32.mrf.mxu3  ;;  %v2371_v49 = vmax.f32 %v933_v39, 0.0  ;;  %v2029_v39 = vld [vmem:[#allocation2 + $0x264] sm:$0xf0]  ;;  %1310 = vmatpush.bf16.msrb.mxu0 %v1875_v25  ;;  %v1911_v25 = vor.u32 %v2041_v19, %v1910_v52  ;;  %v1824_v19 = vld [vmem:[#allocation2 + $0x218] sm:$0xf0] }
 0x251   :  { %v876_v43 = vadd.f32 %v875_v26, %v700_v35  ;;  %v1936_v26 = vld [vmem:[#allocation2 + $0x2f8] sm:$0xf0] }
 0x252   :  { %v971_v0 = vmul.f32 %v2371_v49, %v2371_v49  ;;  %v957_v4 = vadd.f32 %v2371_v49, %v2373_v57 }
 0x253   :  { %v916_v37 = vpop.f32.mrf.mxu0  ;;  %v935_v38 = vpop.f32.mrf.mxu1  ;;  %v895_v53 = vadd.f32 %v894_v31, %v876_v43 }
 0x254   :  { %v917_v40 = vadd.f32 %v916_v37, %v701_v23  ;;  %v985_v7 = vadd.f32 %v971_v0, %v969_v24  ;;  %v1939_v37 = vor.u32 %v2046_v21, %v1936_v26  ;;  %v2024_v26 = vld [vmem:[#allocation2 + $0x244] sm:$0xf] }
 0x255   :  { %v2379_v2 = vmax.f32 %v895_v53, 0.0 }
 0x256   :  { %v936_v46 = vadd.f32 %v935_v38, %v917_v40  ;;  %v1862_v38 = vld [vmem:[#allocation2 + $0x260] sm:$0xf]  ;;  %1329 = vmatpush.bf16.msrb.mxu1 %v1939_v37 }
 0x257   :  { %v970_v10 = vmul.f32 %v2379_v2, %v2379_v2  ;;  %v948_v12 = vadd.f32 %v2379_v2, %v2387_v6  ;;  %v1926_v40 = vld [vmem:[#allocation2 + $0x2e0] sm:$0xf] }
 0x258   :  { %v878_v50 = vpop.f32.mrf.mxu2  ;;  %v897_v51 = vpop.f32.mrf.mxu3  ;;  %v2375_v59 = vmax.f32 %v936_v46, 0.0  ;;  %v1863_v46 = vor.u32 %v2029_v39, %v1862_v38  ;;  %v2040_v38 = vld [vmem:[#allocation2 + $0x2c4] sm:$0xf]  ;;  %v1912_v39 = vld [vmem:[#allocation2 + $0x2c8] sm:$0xf0] }
 0x259   :  { %v879_v54 = vadd.f32 %v878_v50, %v700_v35  ;;  %v976_v42 = vadd.f32 %v970_v10, %v968_v11  ;;  %v2028_v50 = vld [vmem:[#allocation2 + $0x264] sm:$0xf] }
 0x25a   :  { %v973_v5 = vmul.f32 %v2375_v59, %v2375_v59  ;;  %v958_v8 = vadd.f32 %v957_v4, %v2375_v59  ;;  %1273 = vmatpush.bf16.msra.mxu2 %v1863_v46  ;;  %v1838_v46 = vld [vmem:[#allocation2 + $0x230] sm:$0xf] }
 0x25b   :  { %v898_v62 = vadd.f32 %v897_v51, %v879_v54  ;;  %v918_v20 = vpop.f32.mrf.mxu0  ;;  %v937_v3 = vpop.f32.mrf.mxu1  ;;  %v1927_v54 = vor.u32 %v2045_v47, %v1926_v40  ;;  %v2023_v47 = vld [vmem:[#allocation2 + $0x234] sm:$0xf0] }
 0x25c   :  { %v919_v1 = vadd.f32 %v918_v20, %v701_v23  ;;  %v986_v44 = vadd.f32 %v985_v7, %v973_v5  ;;  %v2027_v7 = vld [vmem:[#allocation2 + $0x254] sm:$0xf0] }
 0x25d   :  { %v2389_v27 = vmax.f32 %v898_v62, 0.0  ;;  %v2044_v62 = vld [vmem:[#allocation2 + $0x2e4] sm:$0xf]  ;;  %1292 = vmatpush.bf16.msra.mxu3 %v1927_v54  ;;  %v2039_v54 = vld [vmem:[#allocation2 + $0x2b4] sm:$0xf0] }
 0x25e   :  { %v938_v28 = vadd.f32 %v937_v3, %v919_v1  ;;  %v1867_v1 = vor.u32 %v2028_v50, %v1864_v61  ;;  %v1928_v3 = vld [vmem:[#allocation2 + $0x2e8] sm:$0xf0]  ;;  %v2022_v61 = vld [vmem:[#allocation2 + $0x234] sm:$0xf] }
 0x25f   :  { %v972_v13 = vmul.f32 %v2389_v27, %v2389_v27  ;;  %v949_v56 = vadd.f32 %v948_v12, %v2389_v27  ;;  %v1931_v5 = vor.u32 %v2044_v62, %v1928_v3  ;;  %v2038_v3 = vld [vmem:[#allocation2 + $0x2b4] sm:$0xf] }
 0x260   :  { %v2392_v32 = vmax.f32 %v938_v28, 0.0  ;;  %v880_v9 = vpop.f32.mrf.mxu2  ;;  %v899_v58 = vpop.f32.mrf.mxu3  ;;  %v1854_v28 = vld [vmem:[#allocation2 + $0x250] sm:$0xf]  ;;  %1311 = vmatpush.bf16.msrb.mxu0 %v1867_v1  ;;  %v1840_v1 = vld [vmem:[#allocation2 + $0x238] sm:$0xf0] }
 0x261   :  { %v881_v29 = vadd.f32 %v880_v9, %v700_v35  ;;  %v977_v31 = vadd.f32 %v976_v42, %v972_v13  ;;  %v1855_v10 = vor.u32 %v2027_v7, %v1854_v28  ;;  %1330 = vmatpush.bf16.msrb.mxu1 %v1931_v5  ;;  %v1843_v5 = vor.u32 %v2022_v61, %v1840_v1 }
 0x262   :  { %v959_v30 = vadd.f32 %v958_v8, %v2392_v32  ;;  %v975_v33 = vmul.f32 %v2392_v32, %v2392_v32 }
 0x263   :  { %v900_v55 = vadd.f32 %v899_v58, %v881_v29  ;;  %v1918_v29 = vld [vmem:[#allocation2 + $0x2d0] sm:$0xf]  ;;  %v2026_v58 = vld [vmem:[#allocation2 + $0x254] sm:$0xf]  ;;  %1274 = vmatpush.bf16.msra.mxu2 %v1855_v10  ;;  %v2021_v10 = vld [vmem:[#allocation2 + $0x224] sm:$0xf0] }
 0x264   :  { %v960_v16 = vrot.slane %v959_v30, 4  ;;  %v987_v41 = vadd.f32 %v986_v44, %v975_v33  ;;  %v2043_v33 = vld [vmem:[#allocation2 + $0x2d4] sm:$0xf0] }
 0x265   :  { %v2406_v60 = vmax.f32 %v900_v55, 0.0  ;;  %v1919_v13 = vor.u32 %v2043_v33, %v1918_v29  ;;  %v1856_v55 = vld [vmem:[#allocation2 + $0x258] sm:$0xf0]  ;;  %v1894_v29 = vld [vmem:[#allocation2 + $0x2a0] sm:$0xf] }
 0x266   :  { %v961_v22 = vadd.f32 %v960_v16, %v959_v30  ;;  %v988_v23 = vrot.slane %v987_v41, 4  ;;  %v1859_v16 = vor.u32 %v2026_v58, %v1856_v55  ;;  %v2037_v33 = vld [vmem:[#allocation2 + $0x2a4] sm:$0xf0]  ;;  %v2020_v58 = vld [vmem:[#allocation2 + $0x224] sm:$0xf] }
 0x267   :  { %v950_v34 = vadd.f32 %v949_v56, %v2406_v60  ;;  %v974_v35 = vmul.f32 %v2406_v60, %v2406_v60  ;;  %1293 = vmatpush.bf16.msra.mxu3 %v1919_v13  ;;  %v2025_v56 = vld [vmem:[#allocation2 + $0x244] sm:$0xf0]  ;;  %v1832_v13 = vld [vmem:[#allocation2 + $0x228] sm:$0xf0]  ;;  %v2036_v55 = vld [vmem:[#allocation2 + $0x2a4] sm:$0xf] }
 0x268   :  { %v962_v43 = vrot.slane %v961_v22, 2  ;;  %v989_v45 = vadd.f32 %v988_v23, %v987_v41  ;;  %v1920_v41 = vld [vmem:[#allocation2 + $0x2d8] sm:$0xf0]  ;;  %1312 = vmatpush.bf16.msrb.mxu0 %v1859_v16  ;;  %v1847_v23 = vor.u32 %v2025_v56, %v1846_v17  ;;  %v2019_v16 = vld [vmem:[#allocation2 + $0x214] sm:$0xf0] }
 0x269   :  { %v951_v51 = vrot.slane %v950_v34, 4  ;;  %v978_v53 = vadd.f32 %v977_v31, %v974_v35  ;;  %v1923_v42 = vor.u32 %v2042_v14, %v1920_v41  ;;  %v1848_v31 = vld [vmem:[#allocation2 + $0x248] sm:$0xf0]  ;;  %v1886_v41 = vld [vmem:[#allocation2 + $0x290] sm:$0xf] }
 0x26a   :  { %v963_v20 = vadd.f32 %v962_v43, %v961_v22  ;;  %v990_v0 = vrot.slane %v989_v45, 2  ;;  %v1851_v37 = vor.u32 %v2024_v26, %v1848_v31  ;;  %1275 = vmatpush.bf16.msra.mxu2 %v1847_v23  ;;  %v1896_v14 = vld [vmem:[#allocation2 + $0x2a8] sm:$0xf0]  ;;  %v2018_v56 = vld [vmem:[#allocation2 + $0x214] sm:$0xf] }
 0x26b   :  { %v952_v24 = vadd.f32 %v951_v51, %v950_v34  ;;  %v979_v4 = vrot.slane %v978_v53, 4  ;;  %1331 = vmatpush.bf16.msrb.mxu1 %v1923_v42  ;;  %1294 = vmatpush.bf16.msra.mxu3 %v1911_v25  ;;  %v1839_v51 = vor.u32 %v2023_v47, %v1838_v46  ;;  %v2035_v42 = vld [vmem:[#allocation2 + $0x294] sm:$0xf0]  ;;  %v1827_v25 = vor.u32 %v2018_v56, %v1824_v19  ;;  %v1814_v26 = vld [vmem:[#allocation2 + $0x200] sm:$0xf] }
 0x26c   :  { %v964_v8 = vrot.slane %v963_v20, 1  ;;  %v991_v9 = vadd.f32 %v990_v0, %v989_v45  ;;  %v1915_v45 = vor.u32 %v2040_v38, %v1912_v39  ;;  %1313 = vmatpush.bf16.msrb.mxu0 %v1851_v37  ;;  %v1887_v52 = vor.u32 %v2035_v42, %v1886_v41  ;;  %v2017_v31 = vld [vmem:[#allocation2 + $0x204] sm:$0xf0]  ;;  %v2016_v38 = vld [vmem:[#allocation2 + $0x204] sm:$0xf] }
 0x26d   :  { %v953_v44 = vrot.slane %v952_v24, 2  ;;  %v980_v30 = vadd.f32 %v979_v4, %v978_v53  ;;  %v1902_v53 = vld [vmem:[#allocation2 + $0x2b0] sm:$0xf]  ;;  %v2033_v37 = vld [vmem:[#allocation2 + $0x284] sm:$0xf0]  ;;  %v1815_v39 = vor.u32 %v2017_v31, %v1814_v26 }
 0x26e   :  { %v965_v11 = vadd.f32 %v964_v8, %v963_v20  ;;  %v992_v12 = vrot.slane %v991_v9, 1  ;;  %v1903_v0 = vor.u32 %v2039_v54, %v1902_v53  ;;  %1276 = vmatpush.bf16.msra.mxu2 %v1839_v51 }
 0x26f   :  { %v954_v48 = vadd.f32 %v953_v44, %v952_v24  ;;  %v981_v15 = vrot.slane %v980_v30, 2  ;;  %v1904_v24 = vld [vmem:[#allocation2 + $0x2b8] sm:$0xf0]  ;;  %1332 = vmatpush.bf16.msrb.mxu1 %v1915_v45  ;;  %v1880_v45 = vld [vmem:[#allocation2 + $0x288] sm:$0xf0] }
 0x270   :  { %v2412_v36 = vmul.f32 %v965_v11, %v2258_v63  ;;  %v993_v18 = vadd.f32 %v992_v12, %v991_v9  ;;  %v1907_v28 = vor.u32 %v2038_v3, %v1904_v24  ;;  %v1830_v9 = vld [vmem:[#allocation2 + $0x220] sm:$0xf]  ;;  %1295 = vmatpush.bf16.msra.mxu3 %v1903_v0  ;;  %1314 = vmatpush.bf16.msrb.mxu0 %v1843_v5 }
 0x271   :  { %v955_v21 = vrot.slane %v954_v48, 1  ;;  %v982_v22 = vadd.f32 %v981_v15, %v980_v30  ;;  %v1831_v30 = vor.u32 %v2021_v10, %v1830_v9  ;;  %v1895_v12 = vor.u32 %v2037_v33, %v1894_v29  ;;  %v1822_v15 = vld [vmem:[#allocation2 + $0x210] sm:$0xf]  ;;  %v1809_v9 = vld [vmem:[%s2503_s3 + $0x5] ss:$8 sm:$0x3] }
 0x272   :  { %v995_v34 = vmul.f32 %v993_v18, %v2258_v63  ;;  %v997_v35 = vmul.f32 %v2412_v36, %v2412_v36  ;;  %v1823_v18 = vor.u32 %v2019_v16, %v1822_v15 }
 0x273   :  { %v956_v40 = vadd.f32 %v955_v21, %v954_v48  ;;  %v983_v43 = vrot.slane %v982_v22, 1  ;;  %1333 = vmatpush.bf16.msrb.mxu1 %v1907_v28  ;;  %v1899_v48 = vor.u32 %v2036_v55, %v1896_v14  ;;  %1277 = vmatpush.bf16.msra.mxu2 %v1831_v30  ;;  %v2034_v21 = vld [vmem:[#allocation2 + $0x294] sm:$0xf] }
 0x274   :  { %v999_v50 = vsub.f32 %v995_v34, %v997_v35  ;;  %1296 = vmatpush.bf16.msra.mxu3 %v1895_v12  ;;  %v1878_v35 = vld [vmem:[#allocation2 + $0x280] sm:$0xf] }
 0x275   :  { %v2418_v62 = vmul.f32 %v956_v40, %v2258_v63  ;;  %v984_v20 = vadd.f32 %v983_v43, %v982_v22  ;;  %v1888_v22 = vld [vmem:[#allocation2 + $0x298] sm:$0xf0]  ;;  %v1816_v40 = vld [vmem:[#allocation2 + $0x208] sm:$0xf0]  ;;  %v2032_v43 = vld [vmem:[#allocation2 + $0x284] sm:$0xf]  ;;  %v1879_v47 = vor.u32 %v2033_v37, %v1878_v35 }
 0x276   :  { %v1001_v4 = vmax.f32 %v999_v50, 0.0  ;;  %v1891_v34 = vor.u32 %v2034_v21, %v1888_v22  ;;  %v1819_v51 = vor.u32 %v2016_v38, %v1816_v40  ;;  %v1883_v53 = vor.u32 %v2032_v43, %v1880_v45 }
 0x277   :  { %v994_v7 = vmul.f32 %v984_v20, %v2258_v63  ;;  %v996_v8 = vmul.f32 %v2418_v62, %v2418_v62  ;;  %v1835_v63 = vor.u32 %v2020_v58, %v1832_v13  ;;  %1334 = vmatpush.bf16.msrb.mxu1 %v1899_v48  ;;  %1278 = vmatpush.bf16.msra.mxu2 %v1823_v18  ;;  %v1810_v13 = vld [vmem:[%s2503_s3 + $0x10] ss:$8 sm:$0x3] }
 0x278   :  { %v2423_v44 = vadd.f32 1e-05, %v1001_v4  ;;  %1297 = vmatpush.bf16.msra.mxu3 %v1887_v52 }
 0x279   :  { %v998_v11 = vsub.f32 %v994_v7, %v996_v8  ;;  %1315 = vmatpush.bf16.msrb.mxu0 %v1835_v63 }
 0x27a   :  { %2065 = vrsqrt.f32 %v2423_v44  ;;  %vm1022_vm1 = vweird.f32 %v2423_v44 }
 0x27b   :  { %v1000_v17 = vmax.f32 %v998_v11, 0.0  ;;  %1335 = vmatpush.bf16.msrb.mxu1 %v1891_v34  ;;  %1279 = vmatpush.bf16.msra.mxu2 %v1815_v39 }
 0x27c   :  { %1298 = vmatpush.bf16.msra.mxu3 %v1879_v47 }
 0x27d   :  { %v1004_v23 = vadd.f32 1e-05, %v1000_v17  ;;  %1316 = vmatpush.bf16.msrb.mxu0 %v1827_v25 }
 0x27f   :  { %2067 = vrsqrt.f32 %v1004_v23  ;;  %1336 = vmatpush.bf16.msrb.mxu1 %v1883_v53  ;;  %vm1012_vm4 = vweird.f32 %v1004_v23 }
 0x280   :  { %v2066_v46 = vpop.eup %2065 }
 0x281   :  { %v1017_v50 = vmul.f32 %v2066_v46, %v2423_v44  ;;  %1317 = vmatpush.bf16.msrb.mxu0 %v1819_v51  ;;  %vm1023_vm0 = vweird.f32 %v2066_v46 }
 0x282   :  { %vm1024_vm2 = vmor %vm1022_vm1, %vm1023_vm0 }
 0x283   :  { %v1018_v54 = vmul.f32 %v2066_v46, %v1017_v50 }
 0x285   :  { %v2068_v61 = vpop.eup %2067  ;;  %v1019_v20 = vmul.f32 0.5, %v1018_v54 }
 0x286   :  { %v1007_v0 = vmul.f32 %v2068_v61, %v1004_v23  ;;  %vm1013_vm3 = vweird.f32 %v2068_v61 }
 0x287   :  { %v1020_v1 = vsub.f32 1.5, %v1019_v20  ;;  %vm1014_vm5 = vmor %vm1012_vm4, %vm1013_vm3 }
 0x288   :  { %v1008_v3 = vmul.f32 %v2068_v61, %v1007_v0 }
 0x289   :  { %v1021_v24 = vmul.f32 %v2066_v46, %v1020_v1 }
 0x28a   :  { %v1009_v4 = vmul.f32 0.5, %v1008_v3 }
 0x28b   :  { %v1025_v5 = vsel %vm1024_vm2, %v2066_v46, %v1021_v24 }
 0x28c   :  { %v1010_v28 = vsub.f32 1.5, %v1009_v4  ;;  %v1028_v8 = vrot.slane %v1025_v5, 7 }
 0x28e   :  { %v1011_v7 = vmul.f32 %v2068_v61, %v1010_v28 }
 0x290   :  { %v1015_v10 = vsel %vm1014_vm5, %v2068_v61, %v1011_v7 }
 0x291   :  { %v1029_v29 = vsel %vm213_vm8, %v1015_v10, %v1028_v8 }
 0x292   :  { %v1031_v30 = vmul.f32 %v1809_v9, %v1029_v29 }
 0x294   :  { %v1035_v33 = vperm.slane %v1031_v30, 0  ;;  %v1036_v58 = vperm.slane %v1031_v30, 1 }
 0x296   :  { %v1040_v44 = vmul.f32 %v1036_v58, %v2412_v36  ;;  %v1039_v11 = vmul.f32 %v1035_v33, %v2418_v62  ;;  %v1047_v63 = vmul.f32 %v1035_v33, %v2387_v6  ;;  %v1049_v48 = vmul.f32 %v1035_v33, %v2379_v2 }
 0x297   :  { %v1048_v16 = vmul.f32 %v1036_v58, %v2373_v57  ;;  %v1050_v41 = vmul.f32 %v1036_v58, %v2371_v49  ;;  %v1051_v62 = vmul.f32 %v1035_v33, %v2389_v27  ;;  %v1053_v17 = vmul.f32 %v1035_v33, %v2406_v60 }
 0x298   :  { %v1043_v12 = vrot.slane %v1040_v44, 7  ;;  %v1052_v18 = vmul.f32 %v1036_v58, %v2375_v59  ;;  %v1054_v42 = vmul.f32 %v1036_v58, %v2392_v32  ;;  %v1811_v59 = vld [vmem:[%s2503_s3 + $0x11] ss:$8 sm:$0x3]  ;;  %s2157_s3 = smov [#allocation5]  }
 0x299   :  { %v1109_v27 = vperm.slane %v1811_v59, 1  ;;  %v2449_v34 = vperm.slane %v1811_v59, 0  ;;  %s1512_s25 = sshll.u32 %s2157_s3, 4  ;;  %s1513_s25 = int_to_ptr.vmem [resolvable:$true] %s1512_s25 }
 0x29a   :  { %v1044_v55 = vsel %vm213_vm8, %v1039_v11, %v1043_v12 }
 0x29b   :  { %v1046_v14 = vsub.f32 %v1810_v13, %v1044_v55 }
 0x29d   :  { %v1056_v15 = vperm.slane %v1046_v14, 0  ;;  %v1057_v36 = vperm.slane %v1046_v14, 1 }
 0x29f   :  { %v1060_v56 = vadd.f32 %v1056_v15, %v1047_v63  ;;  %v1062_v52 = vadd.f32 %v1056_v15, %v1049_v48  ;;  %v1061_v19 = vadd.f32 %v1057_v36, %v1048_v16  ;;  %v1063_v6 = vadd.f32 %v1057_v36, %v1050_v41 }
 0x2a0   :  { %v1064_v21 = vadd.f32 %v1056_v15, %v1051_v62  ;;  %v1066_v2 = vadd.f32 %v1056_v15, %v1053_v17  ;;  %v1065_v22 = vadd.f32 %v1057_v36, %v1052_v18  ;;  %v1067_v23 = vadd.f32 %v1057_v36, %v1054_v42 }
 0x2a1   :  { %v1068_v57 = vpack.c.bf16 %v1062_v52, %v1060_v56  ;;  %v1069_v25 = vpack.c.bf16 %v1063_v6, %v1061_v19 }
 0x2a2   :  { %v1070_v49 = vpack.c.bf16 %v1066_v2, %v1064_v21  ;;  %v1071_v26 = vpack.c.bf16 %v1067_v23, %v1065_v22 }
 0x2a3   :  { %1280 = vmatmul.bf16.vlgmr.msra.gmra.mxu2 %v1068_v57  ;;  %1299 = vmatmul.bf16.vlgmr.msra.gmra.mxu3 %v1069_v25 }
 0x2a4   :  { %1318 = vmatmul.bf16.vlgmr.msrb.gmra.mxu0 %v1068_v57  ;;  %1337 = vmatmul.bf16.vlgmr.msrb.gmra.mxu1 %v1069_v25 }
 0x2b3   :  { %1285 = vmatmul.bf16.gmra.mxu2 %v1070_v49  ;;  %1304 = vmatmul.bf16.gmra.mxu3 %v1071_v26 }
 0x2b4   :  { %1323 = vmatmul.bf16.gmra.mxu0 %v1070_v49  ;;  %1342 = vmatmul.bf16.gmra.mxu1 %v1071_v26 }
 0x321   :  { %v1319_v32 = vpop.f32.mrf.mxu0  ;;  %v1338_v60 = vpop.f32.mrf.mxu1 }
 0x322   :  { %v1320_v31 = vadd.f32 %v1319_v32, %v1109_v27 }
 0x324   :  { %v1339_v35 = vadd.f32 %v1338_v60, %v1320_v31 }
 0x326   :  { %v1941_v37 = vmul.f32 -1.442695, %v1339_v35  ;;  %v1281_v38 = vpop.f32.mrf.mxu2  ;;  %v1300_v39 = vpop.f32.mrf.mxu3 }
 0x327   :  { %v1282_v40 = vadd.f32 %v1281_v38, %v2449_v34 }
 0x328   :  { %2069 = vpow2.f32 %v1941_v37 }
 0x329   :  { %v1301_v43 = vadd.f32 %v1300_v39, %v1282_v40  ;;  %v1321_v45 = vpop.f32.mrf.mxu0  ;;  %v1340_v46 = vpop.f32.mrf.mxu1 }
 0x32a   :  { %v1322_v47 = vadd.f32 %v1321_v45, %v1109_v27 }
 0x32b   :  { %v1940_v50 = vmul.f32 -1.442695, %v1301_v43 }
 0x32c   :  { %v1341_v51 = vadd.f32 %v1340_v46, %v1322_v47 }
 0x32d   :  { %2071 = vpow2.f32 %v1940_v50 }
 0x32e   :  { %v2070_v53 = vpop.eup %2069  ;;  %v1943_v54 = vmul.f32 -1.442695, %v1341_v51  ;;  %v1283_v61 = vpop.f32.mrf.mxu2 }
 0x32f   :  { %v1302_v20 = vpop.f32.mrf.mxu3  ;;  %v1373_v0 = vadd.f32 1.0, %v2070_v53  ;;  %v1284_v1 = vadd.f32 %v1283_v61, %v2449_v34 }
 0x330   :  { %2073 = vpow2.f32 %v1943_v54 }
 0x331   :  { %2075 = vrcp.f32 %v1373_v0  ;;  %v1324_v3 = vpop.f32.mrf.mxu0  ;;  %v1343_v24 = vpop.f32.mrf.mxu1  ;;  %v1303_v4 = vadd.f32 %v1302_v20, %v1284_v1  ;;  %v1404_v48 = vand.u32 2147483647, %v1373_v0  ;;  %v1406_v15 = vand.u32 2147483648, %v1373_v0 }
 0x332   :  { %v1325_v5 = vadd.f32 %v1324_v3, %v1109_v27  ;;  %vm1400_vm7 = vweird.f32 %v1373_v0 }
 0x333   :  { %v2072_v28 = vpop.eup %2071  ;;  %v1942_v8 = vmul.f32 -1.442695, %v1303_v4  ;;  %v1407_v2 = vor.u32 1.1754944e-38, %v1406_v15  ;;  %vm1405_vm9 = vcmp.eq.f32.partialorder %v1404_v48, 8.507059e+37 }
 0x334   :  { %v2453_v7 = vadd.f32 1.0, %v2072_v28  ;;  %v1344_v9 = vadd.f32 %v1343_v24, %v1325_v5 }
 0x336   :  { %v2074_v10 = vpop.eup %2073  ;;  %2077 = vrcp.f32 %v2453_v7  ;;  %v1286_v29 = vpop.f32.mrf.mxu2  ;;  %v1945_v58 = vmul.f32 -1.442695, %v1344_v9  ;;  %v1391_v23 = vand.u32 2147483648, %v2453_v7  ;;  %v1389_v32 = vand.u32 2147483647, %v2453_v7 }
 0x337   :  { %v2076_v30 = vpop.eup %2075  ;;  %v2456_v33 = vadd.f32 1.0, %v2074_v10  ;;  %2079 = vpow2.f32 %v1942_v8  ;;  %v1287_v44 = vadd.f32 %v1286_v29, %v2449_v34  ;;  %v1305_v12 = vpop.f32.mrf.mxu3  ;;  %vm1385_vm11 = vweird.f32 %v2453_v7 }
 0x338   :  { %v1396_v11 = vmul.f32 %v2076_v30, %v1373_v0  ;;  %vm1401_vm6 = vweird.f32 %v2076_v30  ;;  %v1392_v37 = vor.u32 1.1754944e-38, %v1391_v23  ;;  %vm1390_vm14 = vcmp.eq.f32.partialorder %v1389_v32, 8.507059e+37 }
 0x339   :  { %2081 = vrcp.f32 %v2456_v33  ;;  %v1326_v13 = vpop.f32.mrf.mxu0  ;;  %v1306_v14 = vadd.f32 %v1305_v12, %v1287_v44  ;;  %v1345_v16 = vpop.f32.mrf.mxu1  ;;  %vm1402_vm8 = vmor %vm1400_vm7, %vm1401_vm6  ;;  %v1436_v38 = vand.u32 2147483648, %v2456_v33  ;;  %v1434_v45 = vand.u32 2147483647, %v2456_v33 }
 0x33a   :  { %v1397_v55 = vsub.f32 1.0, %v1396_v11  ;;  %2083 = vpow2.f32 %v1945_v58  ;;  %v1327_v63 = vadd.f32 %v1326_v13, %v1109_v27  ;;  %vm1430_vm15 = vweird.f32 %v2456_v33 }
 0x33b   :  { %v1944_v62 = vmul.f32 -1.442695, %v1306_v14  ;;  %v1437_v61 = vor.u32 1.1754944e-38, %v1436_v38  ;;  %vm1435_vm1 = vcmp.eq.f32.partialorder %v1434_v45, 8.507059e+37 }
 0x33c   :  { %v2078_v41 = vpop.eup %2077  ;;  %v1398_v36 = vmul.f32 %v2076_v30, %v1397_v55  ;;  %v1346_v17 = vadd.f32 %v1345_v16, %v1327_v63 }
 0x33d   :  { %v2080_v18 = vpop.eup %2079  ;;  %v1381_v42 = vmul.f32 %v2078_v41, %v2453_v7  ;;  %2085 = vpow2.f32 %v1944_v62  ;;  %vm1386_vm10 = vweird.f32 %v2078_v41 }
 0x33e   :  { %v1399_v56 = vadd.f32 %v2076_v30, %v1398_v36  ;;  %v2461_v52 = vadd.f32 1.0, %v2080_v18  ;;  %v1947_v19 = vmul.f32 -1.442695, %v1346_v17  ;;  %v1288_v6 = vpop.f32.mrf.mxu2  ;;  %vm1387_vm12 = vmor %vm1385_vm11, %vm1386_vm10 }
 0x33f   :  { %v2082_v21 = vpop.eup %2081  ;;  %v1382_v22 = vsub.f32 1.0, %v1381_v42  ;;  %v1289_v57 = vadd.f32 %v1288_v6, %v2449_v34  ;;  %v1307_v34 = vpop.f32.mrf.mxu3 }
 0x340   :  { %v2084_v25 = vpop.eup %2083  ;;  %v1403_v49 = vsel %vm1402_vm8, %v2076_v30, %v1399_v56  ;;  %v1426_v26 = vmul.f32 %v2082_v21, %v2456_v33  ;;  %2087 = vrcp.f32 %v2461_v52  ;;  %vm1431_vm13 = vweird.f32 %v2082_v21 }
 0x341   :  { %v1408_v59 = vsel %vm1405_vm9, %v1407_v2, %v1403_v49  ;;  %v1383_v27 = vmul.f32 %v2078_v41, %v1382_v22  ;;  %v2469_v31 = vadd.f32 1.0, %v2084_v25  ;;  %2089 = vpow2.f32 %v1947_v19  ;;  %vm1432_vm0 = vmor %vm1430_vm15, %vm1431_vm13 }
 0x342   :  { %1501 = vst [vmem:[#allocation5 + $0x8] sm:$0xff] %v1408_v59  ;;  %v1427_v60 = vsub.f32 1.0, %v1426_v26  ;;  %v1308_v39 = vadd.f32 %v1307_v34, %v1289_v57  ;;  %v1419_v28 = vand.u32 2147483647, %v2461_v52  ;;  %v1421_v7 = vand.u32 2147483648, %v2461_v52 }
 0x343   :  { %v1384_v35 = vadd.f32 %v2078_v41, %v1383_v27  ;;  %v2086_v40 = vpop.eup %2085  ;;  %2091 = vrcp.f32 %v2469_v31  ;;  %vm1415_vm3 = vweird.f32 %v2461_v52  ;;  %v1464_v58 = vand.u32 2147483647, %v2469_v31 }
 0x344   :  { %v1428_v43 = vmul.f32 %v2082_v21, %v1427_v60  ;;  %v2474_v47 = vadd.f32 1.0, %v2086_v40  ;;  %v1946_v54 = vmul.f32 -1.442695, %v1308_v39  ;;  %vm1420_vm5 = vcmp.eq.f32.partialorder %v1419_v28, 8.507059e+37 }
 0x345   :  { %v1388_v46 = vsel %vm1387_vm12, %v2078_v41, %v1384_v35  ;;  %v1422_v33 = vor.u32 1.1754944e-38, %v1421_v7  ;;  %v1466_v44 = vand.u32 2147483648, %v2469_v31  ;;  %vm1460_vm7 = vweird.f32 %v2469_v31 }
 0x346   :  { %v2088_v50 = vpop.eup %2087  ;;  %v1393_v51 = vsel %vm1390_vm14, %v1392_v37, %v1388_v46  ;;  %v1429_v53 = vadd.f32 %v2082_v21, %v1428_v43  ;;  %2093 = vrcp.f32 %v2474_v47  ;;  %vm1465_vm9 = vcmp.eq.f32.partialorder %v1464_v58, 8.507059e+37 }
 0x347   :  { %1500 = vst [vmem:[#allocation5] sm:$0xff] %v1393_v51  ;;  %v1411_v20 = vmul.f32 %v2088_v50, %v2461_v52  ;;  %v2090_v0 = vpop.eup %2089  ;;  %2095 = vpow2.f32 %v1946_v54  ;;  %vm1416_vm2 = vweird.f32 %v2088_v50  ;;  %v1467_v41 = vor.u32 1.1754944e-38, %v1466_v44 }
 0x348   :  { %v1433_v1 = vsel %vm1432_vm0, %v2082_v21, %v1429_v53  ;;  %v2479_v4 = vadd.f32 1.0, %v2090_v0  ;;  %vm1417_vm4 = vmor %vm1415_vm3, %vm1416_vm2  ;;  %v1449_v36 = vand.u32 2147483647, %v2474_v47  ;;  %v1451_v62 = vand.u32 2147483648, %v2474_v47 }
 0x349   :  { %v1438_v3 = vsel %vm1435_vm1, %v1437_v61, %v1433_v1  ;;  %v1412_v24 = vsub.f32 1.0, %v1411_v20  ;;  %v2092_v5 = vpop.eup %2091  ;;  %vm1445_vm11 = vweird.f32 %v2474_v47 }
 0x34a   :  { %1503 = vst [vmem:[#allocation5 + $0x18] sm:$0xff] %v1438_v3  ;;  %v1456_v9 = vmul.f32 %v2092_v5, %v2469_v31  ;;  %2097 = vrcp.f32 %v2479_v4  ;;  %vm1461_vm6 = vweird.f32 %v2092_v5  ;;  %vm1450_vm13 = vcmp.eq.f32.partialorder %v1449_v36, 8.507059e+37 }
 0x34b   :  { %v1413_v8 = vmul.f32 %v2088_v50, %v1412_v24  ;;  %vm1462_vm8 = vmor %vm1460_vm7, %vm1461_vm6  ;;  %v1452_v6 = vor.u32 1.1754944e-38, %v1451_v62  ;;  %v1496_v21 = vand.u32 2147483648, %v2479_v4  ;;  %v1494_v23 = vand.u32 2147483647, %v2479_v4 }
 0x34c   :  { %v1457_v29 = vsub.f32 1.0, %v1456_v9  ;;  %v2094_v30 = vpop.eup %2093  ;;  %vm1490_vm15 = vweird.f32 %v2479_v4 }
 0x34d   :  { %v1414_v10 = vadd.f32 %v2088_v50, %v1413_v8  ;;  %v1441_v13 = vmul.f32 %v2094_v30, %v2474_v47  ;;  %v2096_v55 = vpop.eup %2095  ;;  %vm1446_vm10 = vweird.f32 %v2094_v30  ;;  %v1497_v26 = vor.u32 1.1754944e-38, %v1496_v21 }
 0x34e   :  { %v1458_v12 = vmul.f32 %v2092_v5, %v1457_v29  ;;  %v1378_v15 = vadd.f32 1.0, %v2096_v55  ;;  %vm1447_vm12 = vmor %vm1445_vm11, %vm1446_vm10  ;;  %vm1495_vm1 = vcmp.eq.f32.partialorder %v1494_v23, 8.507059e+37 }
 0x34f   :  { %v1418_v11 = vsel %vm1417_vm4, %v2088_v50, %v1414_v10  ;;  %v1442_v48 = vsub.f32 1.0, %v1441_v13 }
 0x350   :  { %v1423_v14 = vsel %vm1420_vm5, %v1422_v33, %v1418_v11  ;;  %v1459_v63 = vadd.f32 %v2092_v5, %v1458_v12  ;;  %v2098_v16 = vpop.eup %2097  ;;  %2099 = vrcp.f32 %v1378_v15  ;;  %v1481_v31 = vand.u32 2147483648, %v1378_v15 }
 0x351   :  { %1502 = vst [vmem:[#allocation5 + $0x10] sm:$0xff] %v1423_v14  ;;  %v1443_v18 = vmul.f32 %v2094_v30, %v1442_v48  ;;  %v1486_v42 = vmul.f32 %v2098_v16, %v2479_v4  ;;  %vm1491_vm14 = vweird.f32 %v2098_v16  ;;  %v1479_v35 = vand.u32 2147483647, %v1378_v15 }
 0x352   :  { %v1463_v17 = vsel %vm1462_vm8, %v2092_v5, %v1459_v63  ;;  %vm1492_vm0 = vmor %vm1490_vm15, %vm1491_vm14  ;;  %vm1475_vm3 = vweird.f32 %v1378_v15  ;;  %v1482_v38 = vor.u32 1.1754944e-38, %v1481_v31 }
 0x353   :  { %v1468_v56 = vsel %vm1465_vm9, %v1467_v41, %v1463_v17  ;;  %v1444_v52 = vadd.f32 %v2094_v30, %v1443_v18  ;;  %v1487_v19 = vsub.f32 1.0, %v1486_v42  ;;  %vm1480_vm5 = vcmp.eq.f32.partialorder %v1479_v35, 8.507059e+37 }
 0x354   :  { %1505 = vst [vmem:[#allocation5 + $0x28] sm:$0xff] %v1468_v56 }
 0x355   :  { %v1448_v2 = vsel %vm1447_vm12, %v2094_v30, %v1444_v52  ;;  %v1488_v22 = vmul.f32 %v2098_v16, %v1487_v19 }
 0x356   :  { %v1453_v57 = vsel %vm1450_vm13, %v1452_v6, %v1448_v2  ;;  %v2100_v49 = vpop.eup %2099 }
 0x357   :  { %1504 = vst [vmem:[#allocation5 + $0x20] sm:$0xff] %v1453_v57  ;;  %v1489_v25 = vadd.f32 %v2098_v16, %v1488_v22  ;;  %v1471_v27 = vmul.f32 %v2100_v49, %v1378_v15  ;;  %vm1476_vm2 = vweird.f32 %v2100_v49 }
 0x358   :  { %vm1477_vm4 = vmor %vm1475_vm3, %vm1476_vm2 }
 0x359   :  { %v1493_v59 = vsel %vm1492_vm0, %v2098_v16, %v1489_v25  ;;  %v1472_v60 = vsub.f32 1.0, %v1471_v27 }
 0x35a   :  { %v1498_v32 = vsel %vm1495_vm1, %v1497_v26, %v1493_v59 }
 0x35b   :  { %1507 = vst [vmem:[#allocation5 + $0x38] sm:$0xff] %v1498_v32  ;;  %v1473_v34 = vmul.f32 %v2100_v49, %v1472_v60 }
 0x35d   :  { %v1474_v37 = vadd.f32 %v2100_v49, %v1473_v34 }
 0x35f   :  { %v1478_v39 = vsel %vm1477_vm4, %v2100_v49, %v1474_v37 }
 0x360   :  { %v1483_v40 = vsel %vm1480_vm5, %v1482_v38, %v1478_v39 }
 0x361   :  { %1506 = vst [vmem:[#allocation5 + $0x30] sm:$0xff] %v1483_v40 }
 0x362   :  { %1520 = dma.vmem_to_hbm [thread:$0]  %s1513_s25, 1024, %s1515_s27, [#allocation4], %s2158_s28, %s2158_s28, %s2159_s29  }
 0x363   :  { %2151 = dma.done.wait [#allocation4], 1024  }
 0x364   :  { %2152 = vsyncadd [#allocation4], 4294966272 }
 0x365   :  { %1525 = vsyncpa [#allocation3], 1 }
 0x366   :  { %1526 = vsyncpa [#allocation4], 1 }

</bundles_post_ra>
